<compile_context>
chip_gen: v7x
topology: tpu7x:2x2x1
jax: 0.10.0
libtpu: 0.0.40
codegen_flags: <defaults>
</compile_context>

<pallas_src>
import functools
import math

import jax
import jax.numpy as jnp
import numpy as np
from jax.experimental import pallas as pl
from jax.experimental.pallas import tpu as pltpu


# ----------------------------- kernel helpers -----------------------------

def _layernorm(x, gamma, beta, eps=1e-5):
    mu = jnp.mean(x, axis=-1, keepdims=True)
    var = jnp.mean(jnp.square(x - mu), axis=-1, keepdims=True)
    return (x - mu) * jax.lax.rsqrt(var + eps) * gamma + beta


def _gelu_exact(x):
    # PyTorch F.gelu (exact erf form).
    return 0.5 * x * (1.0 + jax.lax.erf(x * np.float32(0.7071067811865476)))


# ----------------------------- fused kernel -----------------------------

def _transformer_kernel(
    # per-batch activations
    pe_t_ref, cond_ref, x_ref, pe_rows_ref,
    # fixed (non-layer) weights
    w_t1_ref, b_t1_ref, w_t2_ref, b_t2_ref,
    w_text_ref, b_text_ref, w_in_ref, b_in_ref,
    # layer-streamed weights (one layer slice per inner grid step)
    w_qkv_ref, b_qkv_ref, w_ao_ref, b_ao_ref,
    ln1_g_ref, ln1_b_ref, w_f1_ref, b_f1_ref, w_f2_ref, b_f2_ref,
    ln2_g_ref, ln2_b_ref,
    # output projection (padded lane-dense)
    w_op_ref, b_op_ref,
    # output + carried activation scratch
    o_ref, h_ref,
    *, num_heads, seq):
    f32, bf16 = jnp.float32, jnp.bfloat16
    l = pl.program_id(1)
    n_layers = pl.num_programs(1)
    H, S = num_heads, seq
    T = S + 1
    D = w_ao_ref.shape[0]
    hd = D // H

    def mm(a, b):
        # bf16 MXU operands, f32 accumulate.
        return jnp.dot(a.astype(bf16), b.astype(bf16), preferred_element_type=f32)

    # ---- prologue (runs once per batch element, at layer step 0) ----
    @pl.when(l == 0)
    def _():
        # timestep embedding: Linear -> SiLU -> Linear on pe[timesteps[b]]
        h = mm(pe_t_ref[...], w_t1_ref[...]) + b_t1_ref[...]
        h = h * jax.nn.sigmoid(h)                                         # SiLU (f32)
        emb = mm(h, w_t2_ref[...]) + b_t2_ref[...]
        # + text embedding of the (eval-mode masked) condition
        emb = emb + mm(cond_ref[...], w_text_ref[...]) + b_text_ref[...]  # (1, D)
        # input_process on the S motion tokens
        xs = mm(x_ref[...], w_in_ref[...]) + b_in_ref[...]                # (S, D)
        # token rows: [motion tokens (pe[1..S]) ; conditioning token (pe[0])]
        h_ref[0:S, :] = xs + pe_rows_ref[0:S, :]
        h_ref[S:T, :] = emb + pe_rows_ref[S:T, :]

    # ---- encoder layer l (post-norm, as nn.TransformerEncoderLayer) ----
    hcur = h_ref[...]                                                     # (T, D) f32

    # fused QKV projection: one (T, D) x (D, 3D) matmul.
    # 1/sqrt(hd) query scaling is already folded into W_q / b_q.
    qkv = mm(hcur, w_qkv_ref[...]) + b_qkv_ref[...]                       # (T, 3D) f32

    # Per-head attention on 2-D tiles (independent heads; identical MXU shapes
    # to a head-batched dot_general, without lane-splitting reshapes).
    # TODO(synk): tile this flash-style over kv blocks if S grows to thousands
    # of tokens (the per-head score matrix is (T, T)).
    outs = []
    for hh in range(H):
        qh = qkv[:, hh * hd:(hh + 1) * hd]
        kh = qkv[:, D + hh * hd:D + (hh + 1) * hd]
        vh = qkv[:, 2 * D + hh * hd:2 * D + (hh + 1) * hd]
        s = jax.lax.dot_general(qh.astype(bf16), kh.astype(bf16),
                                (((1,), (1,)), ((), ())),
                                preferred_element_type=f32)               # (T, T)
        s = s - jnp.max(s, axis=-1, keepdims=True)
        p = jnp.exp(s)
        p = p * pl.reciprocal(jnp.sum(p, axis=-1, keepdims=True), approx=True)
        outs.append(mm(p, vh))                                            # (T, hd)
    o = jnp.concatenate(outs, axis=-1)                                    # (T, D)

    # single head-merge output projection (K = D), residual + LayerNorm
    attn = mm(o, w_ao_ref[...]) + b_ao_ref[...]
    h1 = _layernorm(hcur + attn, ln1_g_ref[...], ln1_b_ref[...])

    # feed-forward block (exact-erf GELU), residual + LayerNorm
    ff = mm(h1, w_f1_ref[...]) + b_f1_ref[...]
    ff = _gelu_exact(ff)
    ff = mm(ff, w_f2_ref[...]) + b_f2_ref[...]
    h2 = _layernorm(h1 + ff, ln2_g_ref[...], ln2_b_ref[...])
    h_ref[...] = h2

    # ---- epilogue: output_process on the motion rows only (lane-dense) ----
    @pl.when(l == n_layers - 1)
    def _():
        y = mm(h2[0:S, :], w_op_ref[...]) + b_op_ref[...]                 # (S, 128k)
        o_ref[...] = y.astype(o_ref.dtype)


# ----------------------------- parameters -----------------------------

def init_params(key, n_feature, n_textemb, latent_dim, ff_size, num_layers,
                num_heads, max_len=64):
    D, F, L, H = latent_dim, ff_size, num_layers, num_heads
    hd = D // H
    NP = ((n_feature + 127) // 128) * 128          # lane-dense output width

    def nxt():
        nonlocal key
        key, sub = jax.random.split(key)
        return sub

    def rnd(shape):
        return jax.random.normal(nxt(), shape, jnp.float32) * 0.02

    def w(shape):                                   # bf16 matmul weights
        return rnd(shape).astype(jnp.bfloat16)

    p = {}
    p["w_text"], p["b_text"] = w((n_textemb, D)), rnd((1, D))
    p["w_in"],   p["b_in"]   = w((n_feature, D)), rnd((1, D))
    p["w_t1"],   p["b_t1"]   = w((D, D)), rnd((1, D))
    p["w_t2"],   p["b_t2"]   = w((D, D)), rnd((1, D))

    # Fused in-projection (L, D, 3D); fold 1/sqrt(hd) query scaling into W_q/b_q
    # (weight-side transform, removes the per-layer VPU multiply in the kernel).
    scale = np.float32(1.0 / math.sqrt(hd))
    w_q, w_k, w_v = rnd((L, D, D)), rnd((L, D, D)), rnd((L, D, D))
    b_q, b_k, b_v = rnd((L, 1, D)), rnd((L, 1, D)), rnd((L, 1, D))
    p["w_qkv"] = jnp.concatenate([w_q * scale, w_k, w_v], axis=-1).astype(jnp.bfloat16)
    p["b_qkv"] = jnp.concatenate([b_q * scale, b_k, b_v], axis=-1)

    p["w_ao"], p["b_ao"] = w((L, D, D)), rnd((L, 1, D))
    p["ln1_g"], p["ln1_b"] = jnp.ones((L, 1, D), jnp.float32), jnp.zeros((L, 1, D), jnp.float32)
    p["ln2_g"], p["ln2_b"] = jnp.ones((L, 1, D), jnp.float32), jnp.zeros((L, 1, D), jnp.float32)
    p["w_f1"], p["b_f1"] = w((L, D, F)), rnd((L, 1, F))
    p["w_f2"], p["b_f2"] = w((L, F, D)), rnd((L, 1, D))

    # output_process weight, zero-padded to a lane-dense (D, NP) slab.
    w_op, b_op = rnd((D, n_feature)), rnd((1, n_feature))
    p["w_op"] = jnp.zeros((D, NP), jnp.float32).at[:, :n_feature].set(w_op).astype(jnp.bfloat16)
    p["b_op"] = jnp.zeros((1, NP), jnp.float32).at[:, :n_feature].set(b_op)

    # PositionalEncoding buffer (max_len, D).
    position = jnp.arange(max_len, dtype=jnp.float32)[:, None]
    div_term = jnp.exp(jnp.arange(0, D, 2, dtype=jnp.float32) * (-np.log(10000.0) / D))
    ang = position * div_term
    pe = jnp.zeros((max_len, D), jnp.float32)
    pe = pe.at[:, 0::2].set(jnp.sin(ang))
    pe = pe.at[:, 1::2].set(jnp.cos(ang))
    p["pe"] = pe
    return p


# ----------------------------- forward (glue) -----------------------------

def _vmem_limit_bytes(D, F, NP, n_textemb, n_feature, S, T, H):
    """Rough footprint: resident weights + double-buffered per-layer weights +
    per-batch I/O blocks + live intermediates; clamped to a safe range."""
    bf, f4 = 2, 4
    fixed_w = (2 * D * D + n_textemb * D + n_feature * D + D * NP) * bf \
              + (4 * D + NP) * f4 + T * D * f4
    layer_w = (4 * D * D + 2 * D * F) * bf + (9 * D + F) * f4
    io_blk = (D + n_textemb + S * n_feature + S * NP) * f4
    act = (3 * T * D + 3 * T * D + H * T * T + T * F) * f4
    est = fixed_w + 2 * layer_w + 2 * io_blk + act
    return int(min(max(2 * est, 32 * 1024 * 1024), 56 * 1024 * 1024))


def transformer_forward(params, x, emb_text, timesteps, num_heads, force_mask=False):
    """Eval-mode forward.  x: (B, S, n_feature), emb_text: (B, n_textemb),
    timesteps: (B,) int32.  Returns (B, S, n_feature)."""
    B, S, nF = x.shape
    T = S + 1
    D = params["w_in"].shape[1]
    L = params["w_f1"].shape[0]
    Fdim = params["w_f1"].shape[2]
    nT = emb_text.shape[1]
    NP = params["w_op"].shape[1]
    pe = params["pe"]

    # Tiny glue: timestep gather, eval-mode cond mask, PE rows in kernel order
    # [motion tokens pe[1..S] ; conditioning token pe[0]].
    pe_t = pe[timesteps][:, None, :]                                   # (B, 1, D)
    cond = jnp.zeros_like(emb_text) if force_mask else emb_text
    cond = cond[:, None, :]                                            # (B, 1, nT)
    pe_rows = jnp.concatenate([pe[1:T, :], pe[0:1, :]], axis=0)        # (T, D)

    def fixed_spec(a):     # whole array resident; never re-fetched
        nd = a.ndim
        return pl.BlockSpec(a.shape, lambda b, l, _n=nd: (0,) * _n)

    def layer_spec(a):     # stream one layer slice per inner grid step
        tail = tuple(a.shape[1:])
        return pl.BlockSpec((None,) + tail,
                            lambda b, l, _z=(0,) * len(tail): (l,) + _z)

    in_specs = [
        pl.BlockSpec((None, 1, D), lambda b, l: (b, 0, 0)),            # pe[timesteps]
        pl.BlockSpec((None, 1, nT), lambda b, l: (b, 0, 0)),           # masked text cond
        pl.BlockSpec((None, S, nF), lambda b, l: (b, 0, 0)),           # motion input
        fixed_spec(pe_rows),
        fixed_spec(params["w_t1"]), fixed_spec(params["b_t1"]),
        fixed_spec(params["w_t2"]), fixed_spec(params["b_t2"]),
        fixed_spec(params["w_text"]), fixed_spec(params["b_text"]),
        fixed_spec(params["w_in"]), fixed_spec(params["b_in"]),
        layer_spec(params["w_qkv"]), layer_spec(params["b_qkv"]),
        layer_spec(params["w_ao"]), layer_spec(params["b_ao"]),
        layer_spec(params["ln1_g"]), layer_spec(params["ln1_b"]),
        layer_spec(params["w_f1"]), layer_spec(params["b_f1"]),
        layer_spec(params["w_f2"]), layer_spec(params["b_f2"]),
        layer_spec(params["ln2_g"]), layer_spec(params["ln2_b"]),
        fixed_spec(params["w_op"]), fixed_spec(params["b_op"]),
    ]

    kernel = functools.partial(_transformer_kernel, num_heads=num_heads, seq=S)

    y = pl.pallas_call(
        kernel,
        out_shape=jax.ShapeDtypeStruct((B, S, NP), x.dtype),
        grid_spec=pltpu.PrefetchScalarGridSpec(
            num_scalar_prefetch=0,
            grid=(B, L),                          # batch parallel, layers streamed
            in_specs=in_specs,
            out_specs=pl.BlockSpec((None, S, NP), lambda b, l: (b, 0, 0)),
            scratch_shapes=[pltpu.VMEM((T, D), jnp.float32)],
        ),
        compiler_params=pltpu.CompilerParams(
            dimension_semantics=("parallel", "arbitrary"),
            vmem_limit_bytes=_vmem_limit_bytes(D, Fdim, NP, nT, nF, S, T, num_heads),
        ),
    )(pe_t, cond, x, pe_rows,
      params["w_t1"], params["b_t1"], params["w_t2"], params["b_t2"],
      params["w_text"], params["b_text"], params["w_in"], params["b_in"],
      params["w_qkv"], params["b_qkv"], params["w_ao"], params["b_ao"],
      params["ln1_g"], params["ln1_b"],
      params["w_f1"], params["b_f1"], params["w_f2"], params["b_f2"],
      params["ln2_g"], params["ln2_b"],
      params["w_op"], params["b_op"])

    # Drop the lane-padding columns of the output_process result.
    return y[:, :, :nF]


# ----------------------------- main -----------------------------

if __name__ == "__main__":
    B, seq = 2, 8
    n_feature, n_textemb = 12, 16
    latent_dim, num_heads, ff_size, num_layers = 32, 4, 64, 2
    max_len = 64

    key = jax.random.PRNGKey(0)
    kp, kx, kt, ks = jax.random.split(key, 4)
    params = init_params(kp, n_feature, n_textemb, latent_dim, ff_size,
                         num_layers, num_heads, max_len=max_len)

    x = jax.random.normal(kx, (B, seq, n_feature), jnp.float32)
    emb_text = jax.random.normal(kt, (B, n_textemb), jnp.float32)
    timesteps = jax.random.randint(ks, (B,), 0, max_len, dtype=jnp.int32)

    fwd = jax.jit(functools.partial(transformer_forward, num_heads=num_heads))
    out = jax.block_until_ready(fwd(params, x, emb_text, timesteps))
    assert out.shape == (B, seq, n_feature) and out.dtype == jnp.float32
    assert bool(jnp.all(jnp.isfinite(out)))
    print("KERNEL_OK")
</pallas_src>

<mosaic_0001>
module attributes {stable_mosaic.version = 11 : i64} {
  func.func @_transformer_kernel(%arg0: i32, %arg1: i32, %arg2: memref<1x1x32xf32, #tpu.memory_space<vmem>>, %arg3: memref<1x1x16xf32, #tpu.memory_space<vmem>>, %arg4: memref<1x8x12xf32, #tpu.memory_space<vmem>>, %arg5: memref<9x32xf32, #tpu.memory_space<vmem>>, %arg6: memref<32x32xbf16, #tpu.memory_space<vmem>>, %arg7: memref<1x32xf32, #tpu.memory_space<vmem>>, %arg8: memref<32x32xbf16, #tpu.memory_space<vmem>>, %arg9: memref<1x32xf32, #tpu.memory_space<vmem>>, %arg10: memref<16x32xbf16, #tpu.memory_space<vmem>>, %arg11: memref<1x32xf32, #tpu.memory_space<vmem>>, %arg12: memref<12x32xbf16, #tpu.memory_space<vmem>>, %arg13: memref<1x32xf32, #tpu.memory_space<vmem>>, %arg14: memref<1x32x96xbf16, #tpu.memory_space<vmem>>, %arg15: memref<1x1x96xf32, #tpu.memory_space<vmem>>, %arg16: memref<1x32x32xbf16, #tpu.memory_space<vmem>>, %arg17: memref<1x1x32xf32, #tpu.memory_space<vmem>>, %arg18: memref<1x1x32xf32, #tpu.memory_space<vmem>>, %arg19: memref<1x1x32xf32, #tpu.memory_space<vmem>>, %arg20: memref<1x32x64xbf16, #tpu.memory_space<vmem>>, %arg21: memref<1x1x64xf32, #tpu.memory_space<vmem>>, %arg22: memref<1x64x32xbf16, #tpu.memory_space<vmem>>, %arg23: memref<1x1x32xf32, #tpu.memory_space<vmem>>, %arg24: memref<1x1x32xf32, #tpu.memory_space<vmem>>, %arg25: memref<1x1x32xf32, #tpu.memory_space<vmem>>, %arg26: memref<32x128xbf16, #tpu.memory_space<vmem>>, %arg27: memref<1x128xf32, #tpu.memory_space<vmem>>, %arg28: memref<1x8x128xf32, #tpu.memory_space<vmem>>, %arg29: memref<9x32xf32, #tpu.memory_space<vmem>>) attributes {dimension_semantics = [#tpu.dimension_semantics<parallel>, #tpu.dimension_semantics<arbitrary>], iteration_bounds = array<i64: 2, 2>, scalar_prefetch = 0 : i64, scratch_operands = 1 : i64, tpu.core_type = #tpu.core_type<tc>, window_params = [{transform_indices = @transform_0, window_bounds = array<i64: 1, 1, 32>}, {transform_indices = @transform_1, window_bounds = array<i64: 1, 1, 16>}, {transform_indices = @transform_2, window_bounds = array<i64: 1, 8, 12>}, {pipeline_mode = #tpu.pipeline_mode<synchronous>, transform_indices = @transform_3, window_bounds = array<i64: 9, 32>}, {pipeline_mode = #tpu.pipeline_mode<synchronous>, transform_indices = @transform_4, window_bounds = array<i64: 32, 32>}, {pipeline_mode = #tpu.pipeline_mode<synchronous>, transform_indices = @transform_5, window_bounds = array<i64: 1, 32>}, {pipeline_mode = #tpu.pipeline_mode<synchronous>, transform_indices = @transform_6, window_bounds = array<i64: 32, 32>}, {pipeline_mode = #tpu.pipeline_mode<synchronous>, transform_indices = @transform_7, window_bounds = array<i64: 1, 32>}, {pipeline_mode = #tpu.pipeline_mode<synchronous>, transform_indices = @transform_8, window_bounds = array<i64: 16, 32>}, {pipeline_mode = #tpu.pipeline_mode<synchronous>, transform_indices = @transform_9, window_bounds = array<i64: 1, 32>}, {pipeline_mode = #tpu.pipeline_mode<synchronous>, transform_indices = @transform_10, window_bounds = array<i64: 12, 32>}, {pipeline_mode = #tpu.pipeline_mode<synchronous>, transform_indices = @transform_11, window_bounds = array<i64: 1, 32>}, {transform_indices = @transform_12, window_bounds = array<i64: 1, 32, 96>}, {transform_indices = @transform_13, window_bounds = array<i64: 1, 1, 96>}, {transform_indices = @transform_14, window_bounds = array<i64: 1, 32, 32>}, {transform_indices = @transform_15, window_bounds = array<i64: 1, 1, 32>}, {transform_indices = @transform_16, window_bounds = array<i64: 1, 1, 32>}, {transform_indices = @transform_17, window_bounds = array<i64: 1, 1, 32>}, {transform_indices = @transform_18, window_bounds = array<i64: 1, 32, 64>}, {transform_indices = @transform_19, window_bounds = array<i64: 1, 1, 64>}, {transform_indices = @transform_20, window_bounds = array<i64: 1, 64, 32>}, {transform_indices = @transform_21, window_bounds = array<i64: 1, 1, 32>}, {transform_indices = @transform_22, window_bounds = array<i64: 1, 1, 32>}, {transform_indices = @transform_23, window_bounds = array<i64: 1, 1, 32>}, {pipeline_mode = #tpu.pipeline_mode<synchronous>, transform_indices = @transform_24, window_bounds = array<i64: 32, 128>}, {pipeline_mode = #tpu.pipeline_mode<synchronous>, transform_indices = @transform_25, window_bounds = array<i64: 1, 128>}, {transform_indices = @transform_26, window_bounds = array<i64: 1, 8, 128>}]} {
    %c0_i32 = arith.constant 0 : i32
    %0 = arith.cmpi eq, %arg1, %c0_i32 : i32
    %1 = arith.extui %0 : i1 to i32
    %c0_i32_0 = arith.constant 0 : i32
    %2 = arith.cmpi ne, %1, %c0_i32_0 : i32
    scf.if %2 {
      %c0_73 = arith.constant 0 : index
      %c0_74 = arith.constant 0 : index
      %c0_75 = arith.constant 0 : index
      %179 = vector.load %arg2[%c0_73, %c0_74, %c0_75] : memref<1x1x32xf32, #tpu.memory_space<vmem>>, vector<1x1x32xf32>
      %180 = vector.shape_cast %179 : vector<1x1x32xf32> to vector<1x32xf32>
      %c0_76 = arith.constant 0 : index
      %c0_77 = arith.constant 0 : index
      %181 = vector.load %arg6[%c0_76, %c0_77] : memref<32x32xbf16, #tpu.memory_space<vmem>>, vector<32x32xbf16>
      %182 = arith.truncf %180 : vector<1x32xf32> to vector<1x32xbf16>
      %cst_78 = arith.constant dense<0.000000e+00> : vector<1x32xf32>
      %183 = tpu.matmul %182, %181, %cst_78 {dimension_numbers = #tpu.dot_dimension_numbers<[1], [0], [0], [1], [0, 0, 1, 1], [], []>} : vector<1x32xbf16>, vector<32x32xbf16>, vector<1x32xf32> -> vector<1x32xf32>
      %c0_79 = arith.constant 0 : index
      %c0_80 = arith.constant 0 : index
      %184 = vector.load %arg7[%c0_79, %c0_80] : memref<1x32xf32, #tpu.memory_space<vmem>>, vector<1x32xf32>
      %185 = arith.addf %183, %184 : vector<1x32xf32>
      %186 = arith.negf %185 : vector<1x32xf32>
      %187 = math.exp %186 : vector<1x32xf32>
      %cst_81 = arith.constant 1.000000e+00 : f32
      %188 = vector.broadcast %cst_81 : f32 to vector<1x32xf32>
      %189 = arith.addf %188, %187 : vector<1x32xf32>
      %190 = arith.divf %188, %189 : vector<1x32xf32>
      %191 = arith.mulf %185, %190 : vector<1x32xf32>
      %c0_82 = arith.constant 0 : index
      %c0_83 = arith.constant 0 : index
      %192 = vector.load %arg8[%c0_82, %c0_83] : memref<32x32xbf16, #tpu.memory_space<vmem>>, vector<32x32xbf16>
      %193 = arith.truncf %191 : vector<1x32xf32> to vector<1x32xbf16>
      %cst_84 = arith.constant dense<0.000000e+00> : vector<1x32xf32>
      %194 = tpu.matmul %193, %192, %cst_84 {dimension_numbers = #tpu.dot_dimension_numbers<[1], [0], [0], [1], [0, 0, 1, 1], [], []>} : vector<1x32xbf16>, vector<32x32xbf16>, vector<1x32xf32> -> vector<1x32xf32>
      %c0_85 = arith.constant 0 : index
      %c0_86 = arith.constant 0 : index
      %195 = vector.load %arg9[%c0_85, %c0_86] : memref<1x32xf32, #tpu.memory_space<vmem>>, vector<1x32xf32>
      %196 = arith.addf %194, %195 : vector<1x32xf32>
      %c0_87 = arith.constant 0 : index
      %c0_88 = arith.constant 0 : index
      %c0_89 = arith.constant 0 : index
      %197 = vector.load %arg3[%c0_87, %c0_88, %c0_89] : memref<1x1x16xf32, #tpu.memory_space<vmem>>, vector<1x1x16xf32>
      %198 = vector.shape_cast %197 : vector<1x1x16xf32> to vector<1x16xf32>
      %c0_90 = arith.constant 0 : index
      %c0_91 = arith.constant 0 : index
      %199 = vector.load %arg10[%c0_90, %c0_91] : memref<16x32xbf16, #tpu.memory_space<vmem>>, vector<16x32xbf16>
      %200 = arith.truncf %198 : vector<1x16xf32> to vector<1x16xbf16>
      %cst_92 = arith.constant dense<0.000000e+00> : vector<1x32xf32>
      %201 = tpu.matmul %200, %199, %cst_92 {dimension_numbers = #tpu.dot_dimension_numbers<[1], [0], [0], [1], [0, 0, 1, 1], [], []>} : vector<1x16xbf16>, vector<16x32xbf16>, vector<1x32xf32> -> vector<1x32xf32>
      %202 = arith.addf %196, %201 : vector<1x32xf32>
      %c0_93 = arith.constant 0 : index
      %c0_94 = arith.constant 0 : index
      %203 = vector.load %arg11[%c0_93, %c0_94] : memref<1x32xf32, #tpu.memory_space<vmem>>, vector<1x32xf32>
      %204 = arith.addf %202, %203 : vector<1x32xf32>
      %c0_95 = arith.constant 0 : index
      %c0_96 = arith.constant 0 : index
      %c0_97 = arith.constant 0 : index
      %205 = vector.load %arg4[%c0_95, %c0_96, %c0_97] : memref<1x8x12xf32, #tpu.memory_space<vmem>>, vector<1x8x12xf32>
      %206 = vector.shape_cast %205 : vector<1x8x12xf32> to vector<8x12xf32>
      %c0_98 = arith.constant 0 : index
      %c0_99 = arith.constant 0 : index
      %207 = vector.load %arg12[%c0_98, %c0_99] : memref<12x32xbf16, #tpu.memory_space<vmem>>, vector<12x32xbf16>
      %208 = arith.truncf %206 : vector<8x12xf32> to vector<8x12xbf16>
      %cst_100 = arith.constant dense<0.000000e+00> : vector<8x32xf32>
      %209 = tpu.matmul %208, %207, %cst_100 {dimension_numbers = #tpu.dot_dimension_numbers<[1], [0], [0], [1], [0, 0, 1, 1], [], []>} : vector<8x12xbf16>, vector<12x32xbf16>, vector<8x32xf32> -> vector<8x32xf32>
      %c0_101 = arith.constant 0 : index
      %c0_102 = arith.constant 0 : index
      %210 = vector.load %arg13[%c0_101, %c0_102] : memref<1x32xf32, #tpu.memory_space<vmem>>, vector<1x32xf32>
      %211 = vector.broadcast %210 : vector<1x32xf32> to vector<8x32xf32>
      %212 = arith.addf %209, %211 : vector<8x32xf32>
      %c0_103 = arith.constant 0 : index
      %c0_104 = arith.constant 0 : index
      %213 = vector.load %arg5[%c0_103, %c0_104] : memref<9x32xf32, #tpu.memory_space<vmem>>, vector<8x32xf32>
      %214 = arith.addf %212, %213 : vector<8x32xf32>
      %c0_105 = arith.constant 0 : index
      %c0_106 = arith.constant 0 : index
      %215 = vector.load %arg29[%c0_105, %c0_106] : memref<9x32xf32, #tpu.memory_space<vmem>>, vector<8x32xf32>
      tpu.vector_store %arg29[%c0_105, %c0_106], %214 {strides = array<i32>} : memref<9x32xf32, #tpu.memory_space<vmem>>, vector<8x32xf32>,
      %c8 = arith.constant 8 : index
      %c0_107 = arith.constant 0 : index
      %216 = vector.load %arg5[%c8, %c0_107] : memref<9x32xf32, #tpu.memory_space<vmem>>, vector<1x32xf32>
      %217 = arith.addf %204, %216 : vector<1x32xf32>
      %c8_108 = arith.constant 8 : index
      %c0_109 = arith.constant 0 : index
      %218 = vector.load %arg29[%c8_108, %c0_109] : memref<9x32xf32, #tpu.memory_space<vmem>>, vector<1x32xf32>
      tpu.vector_store %arg29[%c8_108, %c0_109], %217 {strides = array<i32>} : memref<9x32xf32, #tpu.memory_space<vmem>>, vector<1x32xf32>,
    } else {
    }
    %c0 = arith.constant 0 : index
    %c0_1 = arith.constant 0 : index
    %3 = vector.load %arg29[%c0, %c0_1] : memref<9x32xf32, #tpu.memory_space<vmem>>, vector<9x32xf32>
    %c0_2 = arith.constant 0 : index
    %c0_3 = arith.constant 0 : index
    %c0_4 = arith.constant 0 : index
    %4 = vector.load %arg14[%c0_2, %c0_3, %c0_4] : memref<1x32x96xbf16, #tpu.memory_space<vmem>>, vector<1x32x96xbf16>
    %5 = vector.shape_cast %4 : vector<1x32x96xbf16> to vector<32x96xbf16>
    %6 = arith.truncf %3 : vector<9x32xf32> to vector<9x32xbf16>
    %cst = arith.constant dense<0.000000e+00> : vector<9x96xf32>
    %7 = tpu.matmul %6, %5, %cst {dimension_numbers = #tpu.dot_dimension_numbers<[1], [0], [0], [1], [0, 0, 1, 1], [], []>} : vector<9x32xbf16>, vector<32x96xbf16>, vector<9x96xf32> -> vector<9x96xf32>
    %c0_5 = arith.constant 0 : index
    %c0_6 = arith.constant 0 : index
    %c0_7 = arith.constant 0 : index
    %8 = vector.load %arg15[%c0_5, %c0_6, %c0_7] : memref<1x1x96xf32, #tpu.memory_space<vmem>>, vector<1x1x96xf32>
    %9 = vector.shape_cast %8 : vector<1x1x96xf32> to vector<1x96xf32>
    %10 = vector.broadcast %9 : vector<1x96xf32> to vector<9x96xf32>
    %11 = arith.addf %7, %10 : vector<9x96xf32>
    %12 = vector.extract_strided_slice %11 {offsets = [0, 0], sizes = [9, 8], strides = [1, 1]} : vector<9x96xf32> to vector<9x8xf32>
    %13 = vector.extract_strided_slice %11 {offsets = [0, 32], sizes = [9, 8], strides = [1, 1]} : vector<9x96xf32> to vector<9x8xf32>
    %14 = vector.extract_strided_slice %11 {offsets = [0, 64], sizes = [9, 8], strides = [1, 1]} : vector<9x96xf32> to vector<9x8xf32>
    %15 = arith.truncf %12 : vector<9x8xf32> to vector<9x8xbf16>
    %16 = arith.truncf %13 : vector<9x8xf32> to vector<9x8xbf16>
    %cst_8 = arith.constant dense<0.000000e+00> : vector<9x9xf32>
    %17 = tpu.matmul %15, %16, %cst_8 {dimension_numbers = #tpu.dot_dimension_numbers<[1], [1], [0], [0], [0, 0, 1, 0], [], []>} : vector<9x8xbf16>, vector<9x8xbf16>, vector<9x9xf32> -> vector<9x9xf32>
    %cst_9 = arith.constant dense<0xFF800000> : vector<9xf32>
    %18 = vector.multi_reduction <maximumf>, %17, %cst_9 [1] : vector<9x9xf32> to vector<9xf32>
    %19 = vector.shape_cast %18 : vector<9xf32> to vector<9x1xf32>
    %20 = vector.broadcast %19 : vector<9x1xf32> to vector<9x9xf32>
    %21 = arith.subf %17, %20 : vector<9x9xf32>
    %22 = math.exp %21 : vector<9x9xf32>
    %cst_10 = arith.constant dense<0.000000e+00> : vector<9xf32>
    %23 = vector.multi_reduction <add>, %22, %cst_10 [1] : vector<9x9xf32> to vector<9xf32>
    %24 = vector.shape_cast %23 : vector<9xf32> to vector<9x1xf32>
    %25 = tpu.reciprocal %24 {approx = true} : vector<9x1xf32> -> vector<9x1xf32>
    %26 = vector.broadcast %25 : vector<9x1xf32> to vector<9x9xf32>
    %27 = arith.mulf %22, %26 : vector<9x9xf32>
    %28 = arith.truncf %27 : vector<9x9xf32> to vector<9x9xbf16>
    %29 = arith.truncf %14 : vector<9x8xf32> to vector<9x8xbf16>
    %cst_11 = arith.constant dense<0.000000e+00> : vector<9x8xf32>
    %30 = tpu.matmul %28, %29, %cst_11 {dimension_numbers = #tpu.dot_dimension_numbers<[1], [0], [0], [1], [0, 0, 1, 1], [], []>} : vector<9x9xbf16>, vector<9x8xbf16>, vector<9x8xf32> -> vector<9x8xf32>
    %31 = vector.extract_strided_slice %11 {offsets = [0, 8], sizes = [9, 8], strides = [1, 1]} : vector<9x96xf32> to vector<9x8xf32>
    %32 = vector.extract_strided_slice %11 {offsets = [0, 40], sizes = [9, 8], strides = [1, 1]} : vector<9x96xf32> to vector<9x8xf32>
    %33 = vector.extract_strided_slice %11 {offsets = [0, 72], sizes = [9, 8], strides = [1, 1]} : vector<9x96xf32> to vector<9x8xf32>
    %34 = arith.truncf %31 : vector<9x8xf32> to vector<9x8xbf16>
    %35 = arith.truncf %32 : vector<9x8xf32> to vector<9x8xbf16>
    %cst_12 = arith.constant dense<0.000000e+00> : vector<9x9xf32>
    %36 = tpu.matmul %34, %35, %cst_12 {dimension_numbers = #tpu.dot_dimension_numbers<[1], [1], [0], [0], [0, 0, 1, 0], [], []>} : vector<9x8xbf16>, vector<9x8xbf16>, vector<9x9xf32> -> vector<9x9xf32>
    %cst_13 = arith.constant dense<0xFF800000> : vector<9xf32>
    %37 = vector.multi_reduction <maximumf>, %36, %cst_13 [1] : vector<9x9xf32> to vector<9xf32>
    %38 = vector.shape_cast %37 : vector<9xf32> to vector<9x1xf32>
    %39 = vector.broadcast %38 : vector<9x1xf32> to vector<9x9xf32>
    %40 = arith.subf %36, %39 : vector<9x9xf32>
    %41 = math.exp %40 : vector<9x9xf32>
    %cst_14 = arith.constant dense<0.000000e+00> : vector<9xf32>
    %42 = vector.multi_reduction <add>, %41, %cst_14 [1] : vector<9x9xf32> to vector<9xf32>
    %43 = vector.shape_cast %42 : vector<9xf32> to vector<9x1xf32>
    %44 = tpu.reciprocal %43 {approx = true} : vector<9x1xf32> -> vector<9x1xf32>
    %45 = vector.broadcast %44 : vector<9x1xf32> to vector<9x9xf32>
    %46 = arith.mulf %41, %45 : vector<9x9xf32>
    %47 = arith.truncf %46 : vector<9x9xf32> to vector<9x9xbf16>
    %48 = arith.truncf %33 : vector<9x8xf32> to vector<9x8xbf16>
    %cst_15 = arith.constant dense<0.000000e+00> : vector<9x8xf32>
    %49 = tpu.matmul %47, %48, %cst_15 {dimension_numbers = #tpu.dot_dimension_numbers<[1], [0], [0], [1], [0, 0, 1, 1], [], []>} : vector<9x9xbf16>, vector<9x8xbf16>, vector<9x8xf32> -> vector<9x8xf32>
    %50 = vector.extract_strided_slice %11 {offsets = [0, 16], sizes = [9, 8], strides = [1, 1]} : vector<9x96xf32> to vector<9x8xf32>
    %51 = vector.extract_strided_slice %11 {offsets = [0, 48], sizes = [9, 8], strides = [1, 1]} : vector<9x96xf32> to vector<9x8xf32>
    %52 = vector.extract_strided_slice %11 {offsets = [0, 80], sizes = [9, 8], strides = [1, 1]} : vector<9x96xf32> to vector<9x8xf32>
    %53 = arith.truncf %50 : vector<9x8xf32> to vector<9x8xbf16>
    %54 = arith.truncf %51 : vector<9x8xf32> to vector<9x8xbf16>
    %cst_16 = arith.constant dense<0.000000e+00> : vector<9x9xf32>
    %55 = tpu.matmul %53, %54, %cst_16 {dimension_numbers = #tpu.dot_dimension_numbers<[1], [1], [0], [0], [0, 0, 1, 0], [], []>} : vector<9x8xbf16>, vector<9x8xbf16>, vector<9x9xf32> -> vector<9x9xf32>
    %cst_17 = arith.constant dense<0xFF800000> : vector<9xf32>
    %56 = vector.multi_reduction <maximumf>, %55, %cst_17 [1] : vector<9x9xf32> to vector<9xf32>
    %57 = vector.shape_cast %56 : vector<9xf32> to vector<9x1xf32>
    %58 = vector.broadcast %57 : vector<9x1xf32> to vector<9x9xf32>
    %59 = arith.subf %55, %58 : vector<9x9xf32>
    %60 = math.exp %59 : vector<9x9xf32>
    %cst_18 = arith.constant dense<0.000000e+00> : vector<9xf32>
    %61 = vector.multi_reduction <add>, %60, %cst_18 [1] : vector<9x9xf32> to vector<9xf32>
    %62 = vector.shape_cast %61 : vector<9xf32> to vector<9x1xf32>
    %63 = tpu.reciprocal %62 {approx = true} : vector<9x1xf32> -> vector<9x1xf32>
    %64 = vector.broadcast %63 : vector<9x1xf32> to vector<9x9xf32>
    %65 = arith.mulf %60, %64 : vector<9x9xf32>
    %66 = arith.truncf %65 : vector<9x9xf32> to vector<9x9xbf16>
    %67 = arith.truncf %52 : vector<9x8xf32> to vector<9x8xbf16>
    %cst_19 = arith.constant dense<0.000000e+00> : vector<9x8xf32>
    %68 = tpu.matmul %66, %67, %cst_19 {dimension_numbers = #tpu.dot_dimension_numbers<[1], [0], [0], [1], [0, 0, 1, 1], [], []>} : vector<9x9xbf16>, vector<9x8xbf16>, vector<9x8xf32> -> vector<9x8xf32>
    %69 = vector.extract_strided_slice %11 {offsets = [0, 24], sizes = [9, 8], strides = [1, 1]} : vector<9x96xf32> to vector<9x8xf32>
    %70 = vector.extract_strided_slice %11 {offsets = [0, 56], sizes = [9, 8], strides = [1, 1]} : vector<9x96xf32> to vector<9x8xf32>
    %71 = vector.extract_strided_slice %11 {offsets = [0, 88], sizes = [9, 8], strides = [1, 1]} : vector<9x96xf32> to vector<9x8xf32>
    %72 = arith.truncf %69 : vector<9x8xf32> to vector<9x8xbf16>
    %73 = arith.truncf %70 : vector<9x8xf32> to vector<9x8xbf16>
    %cst_20 = arith.constant dense<0.000000e+00> : vector<9x9xf32>
    %74 = tpu.matmul %72, %73, %cst_20 {dimension_numbers = #tpu.dot_dimension_numbers<[1], [1], [0], [0], [0, 0, 1, 0], [], []>} : vector<9x8xbf16>, vector<9x8xbf16>, vector<9x9xf32> -> vector<9x9xf32>
    %cst_21 = arith.constant dense<0xFF800000> : vector<9xf32>
    %75 = vector.multi_reduction <maximumf>, %74, %cst_21 [1] : vector<9x9xf32> to vector<9xf32>
    %76 = vector.shape_cast %75 : vector<9xf32> to vector<9x1xf32>
    %77 = vector.broadcast %76 : vector<9x1xf32> to vector<9x9xf32>
    %78 = arith.subf %74, %77 : vector<9x9xf32>
    %79 = math.exp %78 : vector<9x9xf32>
    %cst_22 = arith.constant dense<0.000000e+00> : vector<9xf32>
    %80 = vector.multi_reduction <add>, %79, %cst_22 [1] : vector<9x9xf32> to vector<9xf32>
    %81 = vector.shape_cast %80 : vector<9xf32> to vector<9x1xf32>
    %82 = tpu.reciprocal %81 {approx = true} : vector<9x1xf32> -> vector<9x1xf32>
    %83 = vector.broadcast %82 : vector<9x1xf32> to vector<9x9xf32>
    %84 = arith.mulf %79, %83 : vector<9x9xf32>
    %85 = arith.truncf %84 : vector<9x9xf32> to vector<9x9xbf16>
    %86 = arith.truncf %71 : vector<9x8xf32> to vector<9x8xbf16>
    %cst_23 = arith.constant dense<0.000000e+00> : vector<9x8xf32>
    %87 = tpu.matmul %85, %86, %cst_23 {dimension_numbers = #tpu.dot_dimension_numbers<[1], [0], [0], [1], [0, 0, 1, 1], [], []>} : vector<9x9xbf16>, vector<9x8xbf16>, vector<9x8xf32> -> vector<9x8xf32>
    %88 = tpu.concatenate %30, %49, %68, %87 in 1 : vector<9x8xf32>, vector<9x8xf32>, vector<9x8xf32>, vector<9x8xf32> -> vector<9x32xf32>
    %c0_24 = arith.constant 0 : index
    %c0_25 = arith.constant 0 : index
    %c0_26 = arith.constant 0 : index
    %89 = vector.load %arg16[%c0_24, %c0_25, %c0_26] : memref<1x32x32xbf16, #tpu.memory_space<vmem>>, vector<1x32x32xbf16>
    %90 = vector.shape_cast %89 : vector<1x32x32xbf16> to vector<32x32xbf16>
    %91 = arith.truncf %88 : vector<9x32xf32> to vector<9x32xbf16>
    %cst_27 = arith.constant dense<0.000000e+00> : vector<9x32xf32>
    %92 = tpu.matmul %91, %90, %cst_27 {dimension_numbers = #tpu.dot_dimension_numbers<[1], [0], [0], [1], [0, 0, 1, 1], [], []>} : vector<9x32xbf16>, vector<32x32xbf16>, vector<9x32xf32> -> vector<9x32xf32>
    %c0_28 = arith.constant 0 : index
    %c0_29 = arith.constant 0 : index
    %c0_30 = arith.constant 0 : index
    %93 = vector.load %arg17[%c0_28, %c0_29, %c0_30] : memref<1x1x32xf32, #tpu.memory_space<vmem>>, vector<1x1x32xf32>
    %94 = vector.shape_cast %93 : vector<1x1x32xf32> to vector<1x32xf32>
    %95 = vector.broadcast %94 : vector<1x32xf32> to vector<9x32xf32>
    %96 = arith.addf %92, %95 : vector<9x32xf32>
    %97 = arith.addf %3, %96 : vector<9x32xf32>
    %c0_31 = arith.constant 0 : index
    %c0_32 = arith.constant 0 : index
    %c0_33 = arith.constant 0 : index
    %98 = vector.load %arg18[%c0_31, %c0_32, %c0_33] : memref<1x1x32xf32, #tpu.memory_space<vmem>>, vector<1x1x32xf32>
    %99 = vector.shape_cast %98 : vector<1x1x32xf32> to vector<1x32xf32>
    %c0_34 = arith.constant 0 : index
    %c0_35 = arith.constant 0 : index
    %c0_36 = arith.constant 0 : index
    %100 = vector.load %arg19[%c0_34, %c0_35, %c0_36] : memref<1x1x32xf32, #tpu.memory_space<vmem>>, vector<1x1x32xf32>
    %101 = vector.shape_cast %100 : vector<1x1x32xf32> to vector<1x32xf32>
    %cst_37 = arith.constant dense<0.000000e+00> : vector<9xf32>
    %102 = vector.multi_reduction <add>, %97, %cst_37 [1] : vector<9x32xf32> to vector<9xf32>
    %103 = vector.shape_cast %102 : vector<9xf32> to vector<9x1xf32>
    %cst_38 = arith.constant 3.200000e+01 : f32
    %104 = vector.broadcast %cst_38 : f32 to vector<9x1xf32>
    %105 = arith.divf %103, %104 : vector<9x1xf32>
    %106 = vector.broadcast %105 : vector<9x1xf32> to vector<9x32xf32>
    %107 = arith.subf %97, %106 : vector<9x32xf32>
    %108 = arith.mulf %107, %107 : vector<9x32xf32>
    %cst_39 = arith.constant dense<0.000000e+00> : vector<9xf32>
    %109 = vector.multi_reduction <add>, %108, %cst_39 [1] : vector<9x32xf32> to vector<9xf32>
    %110 = vector.shape_cast %109 : vector<9xf32> to vector<9x1xf32>
    %cst_40 = arith.constant 3.200000e+01 : f32
    %111 = vector.broadcast %cst_40 : f32 to vector<9x1xf32>
    %112 = arith.divf %110, %111 : vector<9x1xf32>
    %113 = vector.broadcast %105 : vector<9x1xf32> to vector<9x32xf32>
    %114 = arith.subf %97, %113 : vector<9x32xf32>
    %cst_41 = arith.constant 9.99999974E-6 : f32
    %115 = vector.broadcast %cst_41 : f32 to vector<9x1xf32>
    %116 = arith.addf %112, %115 : vector<9x1xf32>
    %117 = math.rsqrt %116 : vector<9x1xf32>
    %118 = vector.broadcast %117 : vector<9x1xf32> to vector<9x32xf32>
    %119 = arith.mulf %114, %118 : vector<9x32xf32>
    %120 = vector.broadcast %99 : vector<1x32xf32> to vector<9x32xf32>
    %121 = arith.mulf %119, %120 : vector<9x32xf32>
    %122 = vector.broadcast %101 : vector<1x32xf32> to vector<9x32xf32>
    %123 = arith.addf %121, %122 : vector<9x32xf32>
    %c0_42 = arith.constant 0 : index
    %c0_43 = arith.constant 0 : index
    %c0_44 = arith.constant 0 : index
    %124 = vector.load %arg20[%c0_42, %c0_43, %c0_44] : memref<1x32x64xbf16, #tpu.memory_space<vmem>>, vector<1x32x64xbf16>
    %125 = vector.shape_cast %124 : vector<1x32x64xbf16> to vector<32x64xbf16>
    %126 = arith.truncf %123 : vector<9x32xf32> to vector<9x32xbf16>
    %cst_45 = arith.constant dense<0.000000e+00> : vector<9x64xf32>
    %127 = tpu.matmul %126, %125, %cst_45 {dimension_numbers = #tpu.dot_dimension_numbers<[1], [0], [0], [1], [0, 0, 1, 1], [], []>} : vector<9x32xbf16>, vector<32x64xbf16>, vector<9x64xf32> -> vector<9x64xf32>
    %c0_46 = arith.constant 0 : index
    %c0_47 = arith.constant 0 : index
    %c0_48 = arith.constant 0 : index
    %128 = vector.load %arg21[%c0_46, %c0_47, %c0_48] : memref<1x1x64xf32, #tpu.memory_space<vmem>>, vector<1x1x64xf32>
    %129 = vector.shape_cast %128 : vector<1x1x64xf32> to vector<1x64xf32>
    %130 = vector.broadcast %129 : vector<1x64xf32> to vector<9x64xf32>
    %131 = arith.addf %127, %130 : vector<9x64xf32>
    %cst_49 = arith.constant 5.000000e-01 : f32
    %132 = vector.broadcast %cst_49 : f32 to vector<9x64xf32>
    %133 = arith.mulf %132, %131 : vector<9x64xf32>
    %cst_50 = arith.constant 0.707106769 : f32
    %134 = vector.broadcast %cst_50 : f32 to vector<9x64xf32>
    %135 = arith.mulf %131, %134 : vector<9x64xf32>
    %136 = math.erf %135 : vector<9x64xf32>
    %cst_51 = arith.constant 1.000000e+00 : f32
    %137 = vector.broadcast %cst_51 : f32 to vector<9x64xf32>
    %138 = arith.addf %137, %136 : vector<9x64xf32>
    %139 = arith.mulf %133, %138 : vector<9x64xf32>
    %c0_52 = arith.constant 0 : index
    %c0_53 = arith.constant 0 : index
    %c0_54 = arith.constant 0 : index
    %140 = vector.load %arg22[%c0_52, %c0_53, %c0_54] : memref<1x64x32xbf16, #tpu.memory_space<vmem>>, vector<1x64x32xbf16>
    %141 = vector.shape_cast %140 : vector<1x64x32xbf16> to vector<64x32xbf16>
    %142 = arith.truncf %139 : vector<9x64xf32> to vector<9x64xbf16>
    %cst_55 = arith.constant dense<0.000000e+00> : vector<9x32xf32>
    %143 = tpu.matmul %142, %141, %cst_55 {dimension_numbers = #tpu.dot_dimension_numbers<[1], [0], [0], [1], [0, 0, 1, 1], [], []>} : vector<9x64xbf16>, vector<64x32xbf16>, vector<9x32xf32> -> vector<9x32xf32>
    %c0_56 = arith.constant 0 : index
    %c0_57 = arith.constant 0 : index
    %c0_58 = arith.constant 0 : index
    %144 = vector.load %arg23[%c0_56, %c0_57, %c0_58] : memref<1x1x32xf32, #tpu.memory_space<vmem>>, vector<1x1x32xf32>
    %145 = vector.shape_cast %144 : vector<1x1x32xf32> to vector<1x32xf32>
    %146 = vector.broadcast %145 : vector<1x32xf32> to vector<9x32xf32>
    %147 = arith.addf %143, %146 : vector<9x32xf32>
    %148 = arith.addf %123, %147 : vector<9x32xf32>
    %c0_59 = arith.constant 0 : index
    %c0_60 = arith.constant 0 : index
    %c0_61 = arith.constant 0 : index
    %149 = vector.load %arg24[%c0_59, %c0_60, %c0_61] : memref<1x1x32xf32, #tpu.memory_space<vmem>>, vector<1x1x32xf32>
    %150 = vector.shape_cast %149 : vector<1x1x32xf32> to vector<1x32xf32>
    %c0_62 = arith.constant 0 : index
    %c0_63 = arith.constant 0 : index
    %c0_64 = arith.constant 0 : index
    %151 = vector.load %arg25[%c0_62, %c0_63, %c0_64] : memref<1x1x32xf32, #tpu.memory_space<vmem>>, vector<1x1x32xf32>
    %152 = vector.shape_cast %151 : vector<1x1x32xf32> to vector<1x32xf32>
    %cst_65 = arith.constant dense<0.000000e+00> : vector<9xf32>
    %153 = vector.multi_reduction <add>, %148, %cst_65 [1] : vector<9x32xf32> to vector<9xf32>
    %154 = vector.shape_cast %153 : vector<9xf32> to vector<9x1xf32>
    %cst_66 = arith.constant 3.200000e+01 : f32
    %155 = vector.broadcast %cst_66 : f32 to vector<9x1xf32>
    %156 = arith.divf %154, %155 : vector<9x1xf32>
    %157 = vector.broadcast %156 : vector<9x1xf32> to vector<9x32xf32>
    %158 = arith.subf %148, %157 : vector<9x32xf32>
    %159 = arith.mulf %158, %158 : vector<9x32xf32>
    %cst_67 = arith.constant dense<0.000000e+00> : vector<9xf32>
    %160 = vector.multi_reduction <add>, %159, %cst_67 [1] : vector<9x32xf32> to vector<9xf32>
    %161 = vector.shape_cast %160 : vector<9xf32> to vector<9x1xf32>
    %cst_68 = arith.constant 3.200000e+01 : f32
    %162 = vector.broadcast %cst_68 : f32 to vector<9x1xf32>
    %163 = arith.divf %161, %162 : vector<9x1xf32>
    %164 = vector.broadcast %156 : vector<9x1xf32> to vector<9x32xf32>
    %165 = arith.subf %148, %164 : vector<9x32xf32>
    %cst_69 = arith.constant 9.99999974E-6 : f32
    %166 = vector.broadcast %cst_69 : f32 to vector<9x1xf32>
    %167 = arith.addf %163, %166 : vector<9x1xf32>
    %168 = math.rsqrt %167 : vector<9x1xf32>
    %169 = vector.broadcast %168 : vector<9x1xf32> to vector<9x32xf32>
    %170 = arith.mulf %165, %169 : vector<9x32xf32>
    %171 = vector.broadcast %150 : vector<1x32xf32> to vector<9x32xf32>
    %172 = arith.mulf %170, %171 : vector<9x32xf32>
    %173 = vector.broadcast %152 : vector<1x32xf32> to vector<9x32xf32>
    %174 = arith.addf %172, %173 : vector<9x32xf32>
    %c0_70 = arith.constant 0 : index
    %c0_71 = arith.constant 0 : index
    %175 = vector.load %arg29[%c0_70, %c0_71] : memref<9x32xf32, #tpu.memory_space<vmem>>, vector<9x32xf32>
    tpu.vector_store %arg29[%c0_70, %c0_71], %174 {strides = array<i32>} : memref<9x32xf32, #tpu.memory_space<vmem>>, vector<9x32xf32>,
    %c1_i32 = arith.constant 1 : i32
    %176 = arith.cmpi eq, %arg1, %c1_i32 : i32
    %177 = arith.extui %176 : i1 to i32
    %c0_i32_72 = arith.constant 0 : i32
    %178 = arith.cmpi ne, %177, %c0_i32_72 : i32
    scf.if %178 {
      %179 = vector.extract_strided_slice %174 {offsets = [0, 0], sizes = [8, 32], strides = [1, 1]} : vector<9x32xf32> to vector<8x32xf32>
      %c0_73 = arith.constant 0 : index
      %c0_74 = arith.constant 0 : index
      %180 = vector.load %arg26[%c0_73, %c0_74] : memref<32x128xbf16, #tpu.memory_space<vmem>>, vector<32x128xbf16>
      %181 = arith.truncf %179 : vector<8x32xf32> to vector<8x32xbf16>
      %cst_75 = arith.constant dense<0.000000e+00> : vector<8x128xf32>
      %182 = tpu.matmul %181, %180, %cst_75 {dimension_numbers = #tpu.dot_dimension_numbers<[1], [0], [0], [1], [0, 0, 1, 1], [], []>} : vector<8x32xbf16>, vector<32x128xbf16>, vector<8x128xf32> -> vector<8x128xf32>
      %c0_76 = arith.constant 0 : index
      %c0_77 = arith.constant 0 : index
      %183 = vector.load %arg27[%c0_76, %c0_77] : memref<1x128xf32, #tpu.memory_space<vmem>>, vector<1x128xf32>
      %184 = vector.broadcast %183 : vector<1x128xf32> to vector<8x128xf32>
      %185 = arith.addf %182, %184 : vector<8x128xf32>
      %c0_78 = arith.constant 0 : index
      %c0_79 = arith.constant 0 : index
      %c0_80 = arith.constant 0 : index
      %186 = vector.load %arg28[%c0_78, %c0_79, %c0_80] : memref<1x8x128xf32, #tpu.memory_space<vmem>>, vector<1x8x128xf32>
      %187 = vector.shape_cast %186 : vector<1x8x128xf32> to vector<8x128xf32>
      %188 = vector.shape_cast %185 : vector<8x128xf32> to vector<1x8x128xf32>
      tpu.vector_store %arg28[%c0_78, %c0_79, %c0_80], %188 {strides = array<i32>} : memref<1x8x128xf32, #tpu.memory_space<vmem>>, vector<1x8x128xf32>,
    } else {
    }
    return
  }
  func.func @transform_0(%arg0: i32, %arg1: i32) -> (i32, i32, i32) {
    %c0_i32 = arith.constant 0 : i32
    %c0_i32_0 = arith.constant 0 : i32
    %c0_i32_1 = arith.constant 0 : i32
    return %arg0, %c0_i32, %c0_i32_0 : i32, i32, i32
  }
  func.func @transform_1(%arg0: i32, %arg1: i32) -> (i32, i32, i32) {
    %c0_i32 = arith.constant 0 : i32
    %c0_i32_0 = arith.constant 0 : i32
    %c0_i32_1 = arith.constant 0 : i32
    return %arg0, %c0_i32, %c0_i32_0 : i32, i32, i32
  }
  func.func @transform_2(%arg0: i32, %arg1: i32) -> (i32, i32, i32) {
    %c0_i32 = arith.constant 0 : i32
    %c0_i32_0 = arith.constant 0 : i32
    %c0_i32_1 = arith.constant 0 : i32
    return %arg0, %c0_i32, %c0_i32_0 : i32, i32, i32
  }
  func.func @transform_3(%arg0: i32, %arg1: i32) -> (i32, i32) {
    %c0_i32 = arith.constant 0 : i32
    %c0_i32_0 = arith.constant 0 : i32
    %c0_i32_1 = arith.constant 0 : i32
    return %c0_i32, %c0_i32_0 : i32, i32
  }
  func.func @transform_4(%arg0: i32, %arg1: i32) -> (i32, i32) {
    %c0_i32 = arith.constant 0 : i32
    %c0_i32_0 = arith.constant 0 : i32
    %c0_i32_1 = arith.constant 0 : i32
    return %c0_i32, %c0_i32_0 : i32, i32
  }
  func.func @transform_5(%arg0: i32, %arg1: i32) -> (i32, i32) {
    %c0_i32 = arith.constant 0 : i32
    %c0_i32_0 = arith.constant 0 : i32
    %c0_i32_1 = arith.constant 0 : i32
    return %c0_i32, %c0_i32_0 : i32, i32
  }
  func.func @transform_6(%arg0: i32, %arg1: i32) -> (i32, i32) {
    %c0_i32 = arith.constant 0 : i32
    %c0_i32_0 = arith.constant 0 : i32
    %c0_i32_1 = arith.constant 0 : i32
    return %c0_i32, %c0_i32_0 : i32, i32
  }
  func.func @transform_7(%arg0: i32, %arg1: i32) -> (i32, i32) {
    %c0_i32 = arith.constant 0 : i32
    %c0_i32_0 = arith.constant 0 : i32
    %c0_i32_1 = arith.constant 0 : i32
    return %c0_i32, %c0_i32_0 : i32, i32
  }
  func.func @transform_8(%arg0: i32, %arg1: i32) -> (i32, i32) {
    %c0_i32 = arith.constant 0 : i32
    %c0_i32_0 = arith.constant 0 : i32
    %c0_i32_1 = arith.constant 0 : i32
    return %c0_i32, %c0_i32_0 : i32, i32
  }
  func.func @transform_9(%arg0: i32, %arg1: i32) -> (i32, i32) {
    %c0_i32 = arith.constant 0 : i32
    %c0_i32_0 = arith.constant 0 : i32
    %c0_i32_1 = arith.constant 0 : i32
    return %c0_i32, %c0_i32_0 : i32, i32
  }
  func.func @transform_10(%arg0: i32, %arg1: i32) -> (i32, i32) {
    %c0_i32 = arith.constant 0 : i32
    %c0_i32_0 = arith.constant 0 : i32
    %c0_i32_1 = arith.constant 0 : i32
    return %c0_i32, %c0_i32_0 : i32, i32
  }
  func.func @transform_11(%arg0: i32, %arg1: i32) -> (i32, i32) {
    %c0_i32 = arith.constant 0 : i32
    %c0_i32_0 = arith.constant 0 : i32
    %c0_i32_1 = arith.constant 0 : i32
    return %c0_i32, %c0_i32_0 : i32, i32
  }
  func.func @transform_12(%arg0: i32, %arg1: i32) -> (i32, i32, i32) {
    %c0_i32 = arith.constant 0 : i32
    %c0_i32_0 = arith.constant 0 : i32
    %c0_i32_1 = arith.constant 0 : i32
    return %arg1, %c0_i32, %c0_i32_0 : i32, i32, i32
  }
  func.func @transform_13(%arg0: i32, %arg1: i32) -> (i32, i32, i32) {
    %c0_i32 = arith.constant 0 : i32
    %c0_i32_0 = arith.constant 0 : i32
    %c0_i32_1 = arith.constant 0 : i32
    return %arg1, %c0_i32, %c0_i32_0 : i32, i32, i32
  }
  func.func @transform_14(%arg0: i32, %arg1: i32) -> (i32, i32, i32) {
    %c0_i32 = arith.constant 0 : i32
    %c0_i32_0 = arith.constant 0 : i32
    %c0_i32_1 = arith.constant 0 : i32
    return %arg1, %c0_i32, %c0_i32_0 : i32, i32, i32
  }
  func.func @transform_15(%arg0: i32, %arg1: i32) -> (i32, i32, i32) {
    %c0_i32 = arith.constant 0 : i32
    %c0_i32_0 = arith.constant 0 : i32
    %c0_i32_1 = arith.constant 0 : i32
    return %arg1, %c0_i32, %c0_i32_0 : i32, i32, i32
  }
  func.func @transform_16(%arg0: i32, %arg1: i32) -> (i32, i32, i32) {
    %c0_i32 = arith.constant 0 : i32
    %c0_i32_0 = arith.constant 0 : i32
    %c0_i32_1 = arith.constant 0 : i32
    return %arg1, %c0_i32, %c0_i32_0 : i32, i32, i32
  }
  func.func @transform_17(%arg0: i32, %arg1: i32) -> (i32, i32, i32) {
    %c0_i32 = arith.constant 0 : i32
    %c0_i32_0 = arith.constant 0 : i32
    %c0_i32_1 = arith.constant 0 : i32
    return %arg1, %c0_i32, %c0_i32_0 : i32, i32, i32
  }
  func.func @transform_18(%arg0: i32, %arg1: i32) -> (i32, i32, i32) {
    %c0_i32 = arith.constant 0 : i32
    %c0_i32_0 = arith.constant 0 : i32
    %c0_i32_1 = arith.constant 0 : i32
    return %arg1, %c0_i32, %c0_i32_0 : i32, i32, i32
  }
  func.func @transform_19(%arg0: i32, %arg1: i32) -> (i32, i32, i32) {
    %c0_i32 = arith.constant 0 : i32
    %c0_i32_0 = arith.constant 0 : i32
    %c0_i32_1 = arith.constant 0 : i32
    return %arg1, %c0_i32, %c0_i32_0 : i32, i32, i32
  }
  func.func @transform_20(%arg0: i32, %arg1: i32) -> (i32, i32, i32) {
    %c0_i32 = arith.constant 0 : i32
    %c0_i32_0 = arith.constant 0 : i32
    %c0_i32_1 = arith.constant 0 : i32
    return %arg1, %c0_i32, %c0_i32_0 : i32, i32, i32
  }
  func.func @transform_21(%arg0: i32, %arg1: i32) -> (i32, i32, i32) {
    %c0_i32 = arith.constant 0 : i32
    %c0_i32_0 = arith.constant 0 : i32
    %c0_i32_1 = arith.constant 0 : i32
    return %arg1, %c0_i32, %c0_i32_0 : i32, i32, i32
  }
  func.func @transform_22(%arg0: i32, %arg1: i32) -> (i32, i32, i32) {
    %c0_i32 = arith.constant 0 : i32
    %c0_i32_0 = arith.constant 0 : i32
    %c0_i32_1 = arith.constant 0 : i32
    return %arg1, %c0_i32, %c0_i32_0 : i32, i32, i32
  }
  func.func @transform_23(%arg0: i32, %arg1: i32) -> (i32, i32, i32) {
    %c0_i32 = arith.constant 0 : i32
    %c0_i32_0 = arith.constant 0 : i32
    %c0_i32_1 = arith.constant 0 : i32
    return %arg1, %c0_i32, %c0_i32_0 : i32, i32, i32
  }
  func.func @transform_24(%arg0: i32, %arg1: i32) -> (i32, i32) {
    %c0_i32 = arith.constant 0 : i32
    %c0_i32_0 = arith.constant 0 : i32
    %c0_i32_1 = arith.constant 0 : i32
    return %c0_i32, %c0_i32_0 : i32, i32
  }
  func.func @transform_25(%arg0: i32, %arg1: i32) -> (i32, i32) {
    %c0_i32 = arith.constant 0 : i32
    %c0_i32_0 = arith.constant 0 : i32
    %c0_i32_1 = arith.constant 0 : i32
    return %c0_i32, %c0_i32_0 : i32, i32
  }
  func.func @transform_26(%arg0: i32, %arg1: i32) -> (i32, i32, i32) {
    %c0_i32 = arith.constant 0 : i32
    %c0_i32_0 = arith.constant 0 : i32
    %c0_i32_1 = arith.constant 0 : i32
    return %arg0, %c0_i32, %c0_i32_0 : i32, i32, i32
  }
}

</mosaic_0001>

<bundles_post_ra>
// kernel: transformer_forward.1
= control target key start
LH: loop header
LB: loop body
LE: loop exit
PB: predicated region body
PF: predicated region fallthrough
CT: control target
= control target key end

     0   :  { %s3624_s0 = inlined_call_operand.vmem [shape: f32[2,1,32], index: 0, kind: input, shape index: {}]   ;;  %s3625_s1 = inlined_call_operand.vmem [shape: f32[2,1,16], index: 1, kind: input, shape index: {}]   ;;  %s3626_s2 = inlined_call_operand.vmem [shape: f32[2,8,12], index: 2, kind: input, shape index: {}]   ;;  %s3627_s3 = inlined_call_operand.vmem [shape: f32[9,32], index: 3, kind: input, shape index: {}]   ;;  %s3628_s4 = inlined_call_operand.vmem [shape: bf16[32,32], index: 4, kind: input, shape index: {}]   ;;  %s3629_s5 = inlined_call_operand.vmem [shape: f32[1,32], index: 5, kind: input, shape index: {}]   ;;  %s3630_s6 = inlined_call_operand.vmem [shape: bf16[32,32], index: 6, kind: input, shape index: {}]   ;;  %s3631_s7 = inlined_call_operand.vmem [shape: f32[1,32], index: 7, kind: input, shape index: {}]   ;;  %s3632_s8 = inlined_call_operand.vmem [shape: bf16[16,32], index: 8, kind: input, shape index: {}]   ;;  %s3633_s9 = inlined_call_operand.vmem [shape: f32[1,32], index: 9, kind: input, shape index: {}]   ;;  %s3634_s10 = inlined_call_operand.vmem [shape: bf16[12,32], index: 10, kind: input, shape index: {}]   ;;  %s3635_s11 = inlined_call_operand.vmem [shape: f32[1,32], index: 11, kind: input, shape index: {}]   ;;  %s3636_s12 = inlined_call_operand.vmem [shape: bf16[2,32,96], index: 12, kind: input, shape index: {}]   ;;  %s3637_s13 = inlined_call_operand.vmem [shape: f32[2,1,96], index: 13, kind: input, shape index: {}]   ;;  %s3638_s14 = inlined_call_operand.vmem [shape: bf16[2,32,32], index: 14, kind: input, shape index: {}]   ;;  %s3639_s15 = inlined_call_operand.vmem [shape: f32[2,1,32], index: 15, kind: input, shape index: {}]   ;;  %s3640_s16 = inlined_call_operand.vmem [shape: f32[2,1,32], index: 16, kind: input, shape index: {}]   ;;  %s3641_s17 = inlined_call_operand.vmem [shape: f32[2,1,32], index: 17, kind: input, shape index: {}]   ;;  %s3642_s18 = inlined_call_operand.vmem [shape: bf16[2,32,64], index: 18, kind: input, shape index: {}]   ;;  %s3643_s19 = inlined_call_operand.vmem [shape: f32[2,1,64], index: 19, kind: input, shape index: {}]   ;;  %s3644_s20 = inlined_call_operand.vmem [shape: bf16[2,64,32], index: 20, kind: input, shape index: {}]   ;;  %s3645_s21 = inlined_call_operand.vmem [shape: f32[2,1,32], index: 21, kind: input, shape index: {}]   ;;  %s3646_s22 = inlined_call_operand.vmem [shape: f32[2,1,32], index: 22, kind: input, shape index: {}]   ;;  %s3647_s23 = inlined_call_operand.vmem [shape: f32[2,1,32], index: 23, kind: input, shape index: {}]   ;;  %s3648_s24 = inlined_call_operand.vmem [shape: bf16[32,128], index: 24, kind: input, shape index: {}]   ;;  %s3649_s25 = inlined_call_operand.vmem [shape: f32[1,128], index: 25, kind: input, shape index: {}]   ;;  %s3650_s26 = inlined_call_operand.hbm [shape: f32[2,8,128], index: 26, kind: output, shape index: {}]  }
   0x1   :  { %3672 = sst [smem:[#allocation21_spill]] %s3624_s0 }
   0x2   :  { %3673 = sst [smem:[#allocation22_spill]] %s3625_s1 }
   0x3   :  { %3674 = sst [smem:[#allocation23_spill]] %s3626_s2 }
   0x4   :  { %3675 = sst [smem:[#allocation24_spill]] %s3627_s3 }
   0x5   :  { %3676 = sst [smem:[#allocation25_spill]] %s3628_s4 }
   0x6   :  { %3677 = sst [smem:[#allocation26_spill]] %s3629_s5 }
   0x7   :  { %3678 = sst [smem:[#allocation27_spill]] %s3630_s6 }
   0x8   :  { %3679 = sst [smem:[#allocation28_spill]] %s3631_s7 }
   0x9   :  { %3680 = sst [smem:[#allocation29_spill]] %s3632_s8 }
   0xa   :  { %3681 = sst [smem:[#allocation30_spill]] %s3633_s9 }
   0xb   :  { %3682 = sst [smem:[#allocation31_spill]] %s3634_s10 }
   0xc   :  { %3683 = sst [smem:[#allocation32_spill]] %s3635_s11 }
   0xd   :  { %3684 = sst [smem:[#allocation33_spill]] %s3636_s12 }
   0xe   :  { %3685 = sst [smem:[#allocation34_spill]] %s3638_s14 }
   0xf   :  { %3686 = sst [smem:[#allocation35_spill]] %s3642_s18 }
  0x10   :  { %3687 = sst [smem:[#allocation36_spill]] %s3647_s23 }
  0x11   :  { %3688 = sst [smem:[#allocation37_spill]] %s3648_s24 }
  0x12   :  { %3689 = sst [smem:[#allocation38_spill]] %s3649_s25 }
  0x13   :  { %3690 = sst [smem:[#allocation39_spill]] %s3650_s26 }
  0x14   :  { %31 = vsyncpa [#allocation4], 0 }
  0x15   :  { %33 = vsyncpa [#allocation4 + $0x1], 0  ;;  %s3166_s27 = smov 0   ;;  %s3168_s3 = smov 0  }
  0x16   :  { %s3170_s7 = smov 0   ;;  %s3172_s28 = smov 0  }
  0x17   :  { %s3174_s8 = smov 0   ;;  %s3176_s4 = smov 0  }
  0x18   :  { %s3178_s29 = smov 0   ;;  %s3180_s0 = smov 0  }
  0x19 LB: > { %3691 = sst [smem:[#allocation6_spill]] %s2979_s27  ;;  %s2506_s9 = sadd.s32 4294967295, %s3007_s0   ;;  %s3007_s0 = sphi %s3180_s0, %s39_s0   ;;  %s3003_s29 = sphi %s3178_s29, %s3756_s29   ;;  %s2999_s4 = sphi %s3176_s4, %s3755_s4   ;;  %s2995_s8 = sphi %s3174_s8, %s3754_s8   ;;  %s2991_s28 = sphi %s3172_s28, %s3753_s28   ;;  %s2987_s7 = sphi %s3170_s7, %s3752_s7   ;;  %s2983_s3 = sphi %s3168_s3, %s3751_s3   ;;  %s2979_s27 = sphi %s3166_s27, %s3750_s27  }
  0x1a   : > { %3692 = sst [smem:[#allocation7_spill]] %s2983_s3  ;;  %s2507_s30 = sadd.s32 4294967294, %s3007_s0  }
  0x1b   : > { %3693 = sst [smem:[#allocation8_spill]] %s2987_s7  ;;  %s48_s2 = sadd.s32 1, %s2999_s4 }
  0x1c   : > { %3694 = sst [smem:[#allocation9_spill]] %s2991_s28  ;;  %p49_p0 = scmp.ge.s32.totalorder %s48_s2, 2 }
  0x1d   : > { %3695 = sst [smem:[#allocation10_spill]] %s2995_s8  ;;  %s51_s5 = sadd.s32 1, %s3003_s29 }
  0x1e   : > { %3696 = sst [smem:[#allocation11_spill]] %s2999_s4  ;;  %p689_p1 = scmp.ne.s32.totalorder %s2987_s7, %s2983_s3 }
  0x1f   : > { %3697 = sst [smem:[#allocation12_spill]] %s3003_s29  ;;  %p690_p2 = scmp.eq.s32.totalorder %s2506_s9, 3 }
  0x20   : > { %3698 = sst [smem:[#allocation13_spill]] %s3007_s0  ;;  %s3758_s2 = smov (%p49_p0, %s48_s2), 0 }
  0x21   : > { %3699 = sst [smem:[#allocation14_spill]] %s3758_s2  ;;  %s3760_s5 = smov (!%p49_p0, %s51_s5), %s3003_s29 }
  0x22   : > { %p3215_p3 = por %p690_p2, %p689_p1  ;;  %p695_p4 = scmp.ne.s32.totalorder %s2983_s3, %s2979_s27 }
  0x23   : > { %p53_p5 = scmp.ge.s32.totalorder %s3760_s5, 2  ;;  %p696_p6 = scmp.eq.s32.totalorder %s2507_s30, 3 }
  0x24   : > { %s3700_s10 = scalar_select %p3215_p3, 1, 0 }
  0x25   : > { %p2510_p7 = scmp.ge.s32.totalorder %s3007_s0, 1  ;;  %p846_p8 = scmp.lt.s32.totalorder %s3007_s0, 5 }
  0x26   : > { %3701 = sst [smem:[#allocation15_spill]] %s3700_s10  ;;  %s3762_s5 = smov (%p53_p5, %s3760_s5), 0 }
  0x27   : > { %3702 = sst [smem:[#allocation16_spill]] %s3762_s5  ;;  %p3225_p9 = por %p696_p6, %p695_p4 }
  0x28   : > { %p847_p10 = pnand %p2510_p7, %p846_p8  ;;  %s676_s1 = ssub.s32 %s3003_s29, %s3762_s5 }
  0x29   : > { %s3703_s6 = scalar_select %p3225_p9, 1, 0 }
  0x2a   : > { %s679_s9 = sadd.s32 1, %s2987_s7  ;;  %p677_p11 = scmp.eq.s32.totalorder %s676_s1, 0 }
  0x2b   : > { %3704 = sst [smem:[#allocation17_spill]] %s3703_s6  ;;  %850 = sbr.rel (%p847_p10) target bundleno = 3381 (0xd35), region = 124 }
  0x2c   : > { %s3233_s2 = scalar_select %p677_p11, %s2987_s7, %s679_s9  }
  0x2e   : > { %3705 = sst [smem:[#allocation18_spill]] %s3233_s2 }
  0x32   : > { %s3658_s30 = sand.u32 1, %s2983_s3   ;;  %p965_p12 = scmp.lt.s32.totalorder %s2995_s8, 1 }
  0x33   : > { %s3239_s4 = sshll.u32 %s3658_s30, 3  ;;  %p975_p13 = scmp.lt.s32.totalorder %s2991_s28, 1 }
  0x34   : > { %s3243_s6 = scalar_select %p965_p12, %s2995_s8, 1 }
  0x35   : > { %s3246_s1 = scalar_select %p975_p13, %s2991_s28, 1 }
  0x36   : > { %3706 = sst [smem:[#allocation19_spill]] %s3243_s6  ;;  %s2512_s26 = sshll.u32 %s3243_s6, 3 }
  0x37   : > { %s3707_s29 = sld [smem:[#allocation21_spill]]  ;;  %s2573_s10 = sshll.u32 %s3246_s1, 4 }
  0x38   : > { %s3709_s9 = sld [smem:[#allocation23_spill]]  ;;  %s3710_s12 = sld [smem:[#allocation33_spill]] }
  0x39   : > { %s3712_s14 = sld [smem:[#allocation34_spill]]  ;;  %s3713_s18 = sld [smem:[#allocation35_spill]] }
  0x3a   : > { %s1012_s24 = scalar_lea.vmem %s3645_s21, %s3246_s1  ;;  %s3715_s27 = sld [smem:[#allocation9_spill]] }
  0x3d   : > { %s967_s30 = scalar_lea.vmem %s3707_s29, %s3243_s6 }
  0x3e   : > { %s3261_s8 = scalar_lea.vmem %s3709_s9, %s2512_s26  ;;  %s3266_s11 = scalar_lea.vmem %s3710_s12, %s2573_s10 }
  0x3f   : > { %3711 = sst [smem:[#allocation20_spill]] %s3266_s11  ;;  %s3275_s0 = scalar_lea.vmem %s3712_s14, %s2573_s10 }
  0x40   : > { %s3292_s29 = scalar_lea.vmem %s3713_s18, %s2573_s10  ;;  %s2576_s14 = sshll.u32 %s3246_s1, 5 }
  0x41   : > { %s3302_s3 = scalar_lea.vmem %s3644_s20, %s2576_s14  ;;  %s1015_s11 = scalar_lea.vmem %s3646_s22, %s3246_s1 }
  0x42   : > { %p2521_p0 = scmp.ne.s32.totalorder %s3715_s27, 0 }
  0x43   : > { %s3716_s14 = sld [smem:[#allocation25_spill]] (!%p2521_p0)  ;;  %v3009_v1 = vmov (!%p2521_p0), 0.0   ;;  %vm3010_vm0 = vmmov (!%p2521_p0), 0   ;;  %v1024_v3 = vld [vmem:[%s967_s30] sm:$0x1] (!%p2521_p0)  ;;  %s3717_s12 = sld [smem:[#allocation19_spill]] (!%p2521_p0) }
  0x44   : > { %1023 = sbr.rel (%p2521_p0) target bundleno = 550 (0x226), region = 128  ;;  %2620 = vmatprep.subr.bf16.mxu0 (!%p2521_p0), %v3009_v1  ;;  %2628 = vmatprep.subr.bf16.mxu1 (!%p2521_p0), %v3009_v1  ;;  %v1029_v4 = vpack.c.bf16 (!%p2521_p0), %v1024_v3, %v1024_v3  ;;  %vm1043_vm1 = vcmask (!%p2521_p0), 261120   ;;  %s3718_s5 = sld [smem:[#allocation27_spill]] (!%p2521_p0)  ;;  %vm1165_vm2 = vcmask (!%p2521_p0), 130048   ;;  %vm1232_vm3 = vcmask (!%p2521_p0), 1045504   ;;  %v1212_v24 = vld [vmem:[%s3261_s8] sm:$0xff] (!%p2521_p0) }
  0x45   : > { %2624 = vmatprep.mubr.msk.bf16.mxu0 (!%p2521_p0), %vm3010_vm0, %v3009_v1  ;;  %2632 = vmatprep.mubr.msk.bf16.mxu1 (!%p2521_p0), %vm3010_vm0, %v3009_v1  ;;  %s3719_s27 = sld [smem:[#allocation29_spill]] (!%p2521_p0)  ;;  %s3720_s26 = sld [smem:[#allocation22_spill]] (!%p2521_p0)  ;;  %v1215_v25 = vpack.c.bf16 (!%p2521_p0), %v1212_v24, %v1212_v24  ;;  %vm1228_vm4 = vcmask (!%p2521_p0), 97280   ;;  %vm1281_vm5 = vcmask (!%p2521_p0), 253952  }
  0x46   : > { %s3722_s18 = sld [smem:[#allocation26_spill]] (!%p2521_p0)  ;;  %s3723_s25 = sld [smem:[#allocation31_spill]] (!%p2521_p0) }
  0x47   : > { %s3724_s10 = sld [smem:[#allocation28_spill]] (!%p2521_p0)  ;;  %s3725_s23 = sld [smem:[#allocation30_spill]] (!%p2521_p0) }
  0x49   : > { %v2832_v0 = vld [vmem:[%s3716_s14] sm:$0xff] (!%p2521_p0)   ;;  %v2833_v2 = vld [vmem:[%s3716_s14 + $0x8] sm:$0xff] (!%p2521_p0)  }
  0x4a   : > { %2621 = vmatpush3.bf16.msra.mxu0 (!%p2521_p0), %v2832_v0  ;;  %v2834_v5 = vld [vmem:[%s3718_s5] sm:$0xff] (!%p2521_p0)   ;;  %v2835_v6 = vld [vmem:[%s3718_s5 + $0x8] sm:$0xff] (!%p2521_p0)  }
  0x4b   : > { %2622 = vmatprep.subr.bf16.mxu0 %v3009_v1  ;;  %2629 = vmatpush3.bf16.msra.mxu1 %v2834_v5  ;;  %v2836_v7 = vld [vmem:[%s3719_s27] sm:$0xff]   ;;  %s3721_s2 = scalar_lea.vmem %s3720_s26, %s3717_s12  ;;  %s3726_s26 = sld [smem:[#allocation24_spill]] }
  0x4c   : > { %2630 = vmatprep.subr.bf16.mxu1 %v3009_v1  ;;  %v1155_v8 = vld [vmem:[%s3721_s2] sm:$0x1]  ;;  %s3727_s12 = sld [smem:[#allocation32_spill]] }
  0x4d   : > { %v1158_v9 = vpack.c.bf16 %v1155_v8, %v1155_v8  ;;  %v1030_v10 = vld [vmem:[%s3722_s18] sm:$0x1] }
  0x4e   : > { %2623 = vmatpush3.bf16.msra.mxu0 %v2833_v2  ;;  %v2837_v19 = vld [vmem:[%s3723_s25] sm:$0x3f]  }
  0x4f   : > { %2636 = vmatprep.subr.bf16.mxu0 %v3009_v1  ;;  %2631 = vmatpush3.bf16.msra.mxu1 %v2835_v6  ;;  %v1234_v23 = vsel %vm1232_vm3, %v2837_v19, 0  ;;  %v1099_v30 = vld [vmem:[%s3724_s10] sm:$0x1] }
  0x50   : > { %2642 = vmatprep.subr.bf16.mxu1 %v3009_v1  ;;  %v1210_v35 = vld [vmem:[%s3725_s23] sm:$0x1] }
  0x51   : > { %2625 = vmatmul.mubr.msk.bf16.vlgmr.msra.gmra.mrb[0].mxu0 %vm1043_vm1, %v1029_v4  ;;  %v1279_v38 = vld [vmem:[%s3726_s26 + $0x8] sm:$0x1]  ;;  %v1276_v43 = vld [vmem:[%s3726_s26] sm:$0xff] }
  0x52   : > { %2638 = vmatprep.mubr.msk.bf16.mxu0 %vm3010_vm0, %v3009_v1  ;;  %2637 = vmatpush3.bf16.msra.mxu0 %v2836_v7  ;;  %v2531_v40 = vld [vmem:[%s3727_s12] ss:$0 sm:$0xff] }
  0x59   : > { %2639 = vmatmul.mubr.msk.bf16.vlgmr.msra.gmra.mrb[4].mxu0 %vm1165_vm2, %v1158_v9 }
 0x124   : > { %v1081_v11 = vpop.f32.mrb[0].mxu0 }
 0x125   : > { %v1082_v12 = vadd.f32 %v1081_v11, %v1030_v10  ;;  %v2626_v13 = vpop.f32.mrb[1].mxu0 }
 0x126   : > { %v1084_v14 = vpop.f32.mrb[2].mxu0 }
 0x127   : > { %v2525_v15 = vmul.f32 -1.442695, %v1082_v12  ;;  %v2627_v16 = vpop.f32.mrb[3].mxu0 }
 0x129   : > { %2838 = vpow2.f32 %v2525_v15 }
 0x12c   : > { %v1203_v26 = vpop.f32.mrb[4].mxu0 }
 0x12d   : > { %v2640_v27 = vpop.f32.mrb[5].mxu0 }
 0x12e   : > { %v1206_v28 = vpop.f32.mrb[6].mxu0 }
 0x12f   : > { %v2641_v29 = vpop.f32.mrb[7].mxu0 }
 0x133   : > { %v2839_v17 = vpop.eup %2838 }
 0x134   : > { %v1090_v18 = vadd.f32 1.0, %v2839_v17 }
 0x136   : > { %2840 = vrcp.f32 %v1090_v18 }
 0x140   : > { %v2841_v20 = vpop.eup %2840 }
 0x141   : > { %v1093_v21 = vmul.f32 %v2841_v20, %v1082_v12 }
 0x143   : > { %v1098_v22 = vpack.c.bf16 %v1093_v21, %v1093_v21 }
 0x145   : > { %2633 = vmatmul.mubr.msk.bf16.vlgmr.msra.gmra.mrb[0].mxu1 %vm1043_vm1, %v1098_v22 }
 0x146   : > { %2643 = vmatpush3.bf16.msra.mxu1 %v1234_v23  ;;  %2644 = vmatprep.mubr.msk.bf16.mxu1 %vm3010_vm0, %v3009_v1 }
 0x14d   : > { %2645 = vmatmul.mubr.msk.bf16.vlgmr.msra.gmra.mrb[4].mxu1 %vm1228_vm4, %v1215_v25 }
 0x218   : > { %v1149_v31 = vpop.f32.mrb[0].mxu1 }
 0x219   : > { %v1150_v32 = vadd.f32 %v1149_v31, %v1099_v30  ;;  %v2634_v33 = vpop.f32.mrb[1].mxu1 }
 0x21a   : > { %v1152_v34 = vpop.f32.mrb[2].mxu1 }
 0x21b   : > { %v1209_v36 = vadd.f32 %v1203_v26, %v1150_v32  ;;  %v2635_v37 = vpop.f32.mrb[3].mxu1 }
 0x21d   : > { %v1211_v39 = vadd.f32 %v1210_v35, %v1209_v36 }
 0x21f   : > { %v1280_v41 = vadd.f32 %v1279_v38, %v1211_v39 }
 0x220   : > { %v1270_v42 = vpop.f32.mrb[4].mxu1 }
 0x221   : > { %1282 = vst.msk [vmem:[#allocation2 + $0x8] sm:$0x1] %vm1281_vm5, %v1280_v41  ;;  %v1271_v44 = vadd.f32 %v2531_v40, %v1270_v42  ;;  %v2646_v45 = vpop.f32.mrb[5].mxu1 }
 0x222   : > { %v1273_v46 = vpop.f32.mrb[6].mxu1 }
 0x223   : > { %v1277_v47 = vadd.f32 %v1276_v43, %v1271_v44  ;;  %v2647_v48 = vpop.f32.mrb[7].mxu1 }
 0x225   : > { %1278 = vst.msk [vmem:[#allocation2] sm:$0xff] %vm1043_vm1, %v1277_v47 }
 0x226 PF: > { %s3728_s18 = sld [smem:[#allocation20_spill]]  ;;  %v3011_v50 = vmov 0.0   ;;  %vm3012_vm6 = vmmov 0   ;;  %vm1309_vm7 = vcmask 261120   ;;  %s3729_s28 = scalar_lea.vmem %s3637_s13, %s3246_s1  ;;  %vm1358_vm8 = vcmask 64512  }
 0x227   : > { %2648 = vmatprep.subr.bf16.mxu0 %v3011_v50  ;;  %2656 = vmatprep.subr.bf16.mxu1 %v3011_v50  ;;  %v2534_v55 = vld [vmem:[%s3729_s28] ss:$0 sm:$0xff]  ;;  %s3013_s27 = smov 120   ;;  %s3014_s23 = smov 96   ;;  %vm1406_vm9 = vcmask 72704   ;;  %vm1410_vm10 = vcmask 65536  }
 0x228   : > { %2652 = vmatprep.mubr.msk.bf16.mxu0 %vm3012_vm6, %v3011_v50  ;;  %v3375_v53 = vld [vmem:[#allocation2 + $0x8] sm:$0x1]  ;;  %2658 = vmatprep.mubr.msk.bf16.mxu1 %vm3012_vm6, %v3011_v50  ;;  %s3015_s8 = smov 80   ;;  %s3016_s6 = smov 88   ;;  %vm1436_vm11 = vcmask 1043456   ;;  %vm1437_vm12 = vcmask 1044480  }
 0x229   : > { %s3017_s7 = smov 72   ;;  %s3018_s9 = smov 112   ;;  %vm1879_vm13 = vcmask 130048   ;;  %vm1882_vm14 = vcmask 195584   ;;  %vm1960_vm15 = vcmask 253952   ;;  %vm2119_vm0 = vcmask 523264  }
 0x22a   : > { %s3019_s12 = smov 104   ;;  %s3020_s2 = smov 64  }
 0x22b   : > { %s3021_s25 = smov 56   ;;  %s3023_s30 = smov 40  }
 0x22c   : > { %v2857_v49 = vld [vmem:[%s3728_s18] sm:$0xff]   ;;  %v2858_v51 = vld [vmem:[%s3728_s18 + $0x8] sm:$0xff]   ;;  %s3022_s18 = smov 48   ;;  %s3025_s10 = smov 8  }
 0x22d   : > { %2649 = vmatpush3.bf16.msra.mxu0 %v2857_v49  ;;  %v3373_v52 = vld [vmem:[#allocation2] sm:$0xff]  ;;  %s3026_s28 = smov 16  }
 0x22e   : > { %2650 = vmatprep.subr.bf16.mxu0 %v3011_v50  ;;  %v1289_v54 = vpack.c.bf16 %v3375_v53, %v3373_v52 }
 0x231   : > { %2651 = vmatpush3.bf16.msra.mxu0 %v2858_v51 }
 0x232   : > { %2662 = vmatprep.subr.bf16.mxu0 %v3011_v50 }
 0x234   : > { %2653 = vmatmul.mubr.msk.bf16.vlgmr.msra.gmra.mrb[0].mxu0 %vm1309_vm7, %v1289_v54 }
 0x235   : > { %2664 = vmatprep.mubr.msk.bf16.mxu0 %vm3012_vm6, %v3011_v50 }
 0x307   : > { %v1347_v56 = vpop.f32.mrb[0].mxu0 }
 0x308   : > { %v2654_v57 = vpop.f32.mrb[1].mxu0  ;;  %v1348_v59 = vadd.f32 %v2534_v55, %v1347_v56 }
 0x309   : > { %v1350_v58 = vpop.f32.mrb[2].mxu0 }
 0x30a   : > { %v1351_v60 = vadd.f32 %v2534_v55, %v1350_v58  ;;  %v2655_v61 = vpop.f32.mrb[3].mxu0 }
 0x30c   : > { %v3391_v62 = vpack.c.bf16 %v1351_v60, %v1348_v59 }
 0x30e   : > { %1484 = vrot.lane.b32.xlu1 %v3391_v62, %s3013_s27  ;;  %1356 = vrot.lane.b32.xlu0 %v3391_v62, %s3014_s23  ;;  %s3027_s27 = smov 24   ;;  %s3734_s23 = sld [smem:[#allocation36_spill]] }
 0x312   : > { %1609 = vrot.lane.b32.xlu1 %v3391_v62, %s3015_s8  ;;  %1486 = vrot.lane.b32.xlu0 %v3391_v62, %s3016_s6  ;;  %s3730_s8 = scalar_lea.vmem %s3639_s15, %s3246_s1  ;;  %s3736_s6 = sld [smem:[#allocation9_spill]] }
 0x316   : > { %1732 = vrot.lane.b32.xlu1 %v3391_v62, %s3017_s7  ;;  %1607 = vrot.lane.b32.xlu0 %v3391_v62, %s3018_s9 }
 0x318   : > { %p2564_p1 = scmp.ne.s32.totalorder %s3736_s6, 1 }
 0x319   : > { %vm3029_vm1 = vmmov (!%p2564_p1), 0  }
 0x31a   : > { %1730 = vrot.lane.b32.xlu0 %v3391_v62, %s3019_s12 }
 0x380   : > { %v1357_v63 = vpop.permute.xlu0 %1356  ;;  %v1485_v2 = vpop.permute.xlu1 %1484 }
 0x381   : > { %v1363_v0 = vsel %vm1358_vm8, %v1357_v63, 0 }
 0x382   : > { %2657 = vmatpush3.bf16.xpose.msra.mxu1 %v1363_v0 }
 0x383   : > { %2668 = vmatprep.subr.bf16.mxu1 %v3011_v50 }
 0x384   : > { %v1487_v1 = vpop.permute.xlu0 %1486  ;;  %v1610_v4 = vpop.permute.xlu1 %1609 }
 0x385   : > { %v1492_v3 = vsel %vm1358_vm8, %v1487_v1, 0  ;;  %v1615_v5 = vsel %vm1358_vm8, %v1610_v4, 0 }
 0x388   : > { %v1733_v6 = vpop.permute.xlu1 %1732  ;;  %v1608_v7 = vpop.permute.xlu0 %1607 }
 0x389   : > { %2659 = vmatmul.mubr.msk.bf16.vlgmr.msra.gmra.mrb[0].mxu1 %vm1358_vm8, %v3391_v62  ;;  %v1738_v8 = vsel %vm1358_vm8, %v1733_v6, 0 }
 0x38a   : > { %2669 = vmatpush3.bf16.xpose.msra.mxu1 %v1492_v3  ;;  %2670 = vmatprep.mubr.msk.bf16.mxu1 %vm3012_vm6, %v3011_v50 }
 0x38b   : > { %2680 = vmatprep.subr.bf16.mxu1 %v3011_v50 }
 0x38c   : > { %v1731_v9 = vpop.permute.xlu0 %1730 }
 0x391   : > { %2671 = vmatmul.mubr.msk.bf16.vlgmr.msra.gmra.mrb[4].mxu1 %vm1358_vm8, %v1485_v2 }
 0x392   : > { %2681 = vmatpush3.bf16.xpose.msra.mxu1 %v1615_v5  ;;  %2682 = vmatprep.mubr.msk.bf16.mxu1 %vm3012_vm6, %v3011_v50 }
 0x393   : > { %2692 = vmatprep.subr.bf16.mxu1 %v3011_v50 }
 0x399   : > { %2683 = vmatmul.mubr.msk.bf16.vlgmr.msra.gmra.mrb[8].mxu1 %vm1358_vm8, %v1608_v7 }
 0x39a   : > { %2693 = vmatpush3.bf16.xpose.msra.mxu1 %v1738_v8  ;;  %2694 = vmatprep.mubr.msk.bf16.mxu1 %vm3012_vm6, %v3011_v50 }
 0x39b   : > { %2704 = vmatprep.subr.bf16.mxu1 %v3011_v50 }
 0x3a1   : > { %2695 = vmatmul.mubr.msk.bf16.vlgmr.msra.gmra.mrb[12].mxu1 %vm1358_vm8, %v1731_v9 }
 0x3a2   : > { %2708 = vmatprep.mubr.msk.bf16.mxu1 %vm3012_vm6, %v3011_v50 }
 0x45c   : > { %v1399_v10 = vpop.f32.mrb[0].mxu1 }
 0x45d   : > { %v2660_v11 = vpop.f32.mrb[1].mxu1  ;;  %v1407_v12 = vsel %vm1406_vm9, %v1399_v10, -inf }
 0x45e   : > { %1408 = vmax.xlane.f32.xlu1 %v1407_v12  ;;  %v1402_v13 = vpop.f32.mrb[2].mxu1 }
 0x45f   : > { %v2661_v14 = vpop.f32.mrb[3].mxu1  ;;  %v1411_v15 = vsel %vm1410_vm10, %v1402_v13, -inf }
 0x460   : > { %1412 = vmax.xlane.f32.xlu0 %v1411_v15  ;;  %v3024_v14 = vmov 65535  }
 0x461   : > { %v1438_v15 = vsel %vm1436_vm11, 4294967295, %v3024_v14 }
 0x464   : > { %v3423_v16 = vpop.f32.mrb[4].mxu1 }
 0x465   : > { %v2672_v17 = vpop.f32.mrb[5].mxu1  ;;  %v1535_v18 = vsel %vm1406_vm9, %v3423_v16, -inf }
 0x466   : > { %1536 = vmax.xlane.f32.xlu0 %v1535_v18  ;;  %v1531_v19 = vpop.f32.mrb[6].mxu1  ;;  %v1439_v18 = vsel %vm1437_vm12, %v1438_v15, 0 }
 0x467   : > { %v2673_v20 = vpop.f32.mrb[7].mxu1  ;;  %v1538_v21 = vsel %vm1410_vm10, %v1531_v19, -inf }
 0x468   : > { %1539 = vmax.xlane.f32.xlu1 %v1538_v21 }
 0x46c   : > { %v3428_v22 = vpop.f32.mrb[8].mxu1 }
 0x46d   : > { %v2684_v23 = vpop.f32.mrb[9].mxu1  ;;  %v1658_v24 = vsel %vm1406_vm9, %v3428_v22, -inf }
 0x46e   : > { %1659 = vmax.xlane.f32.xlu0 %v1658_v24  ;;  %v1654_v25 = vpop.f32.mrb[10].mxu1 }
 0x46f   : > { %v2685_v26 = vpop.f32.mrb[11].mxu1  ;;  %v1661_v27 = vsel %vm1410_vm10, %v1654_v25, -inf }
 0x470   : > { %1662 = vmax.xlane.f32.xlu1 %v1661_v27 }
 0x474   : > { %v1774_v28 = vpop.f32.mrb[12].mxu1 }
 0x475   : > { %v2696_v29 = vpop.f32.mrb[13].mxu1  ;;  %v1781_v30 = vsel %vm1406_vm9, %v1774_v28, -inf }
 0x476   : > { %1782 = vmax.xlane.f32.xlu0 %v1781_v30  ;;  %v1777_v31 = vpop.f32.mrb[14].mxu1 }
 0x477   : > { %v2697_v32 = vpop.f32.mrb[15].mxu1  ;;  %v1784_v33 = vsel %vm1410_vm10, %v1777_v31, -inf }
 0x478   : > { %1785 = vmax.xlane.f32.xlu1 %v1784_v33 }
 0x4eb   : > { %v1409_v34 = vpop.xlane.xlu1 %1408 }
 0x4ec   : > { %v1414_v35 = vsub.f32 %v1399_v10, %v1409_v34 }
 0x4ed   : > { %v1413_v36 = vpop.xlane.xlu0 %1412 }
 0x4ee   : > { %v1416_v37 = vmul.f32 1.442695, %v1414_v35  ;;  %v1415_v38 = vsub.f32 %v1402_v13, %v1413_v36 }
 0x4f0   : > { %2867 = vpow2.f32 %v1416_v37  ;;  %v1418_v39 = vmul.f32 1.442695, %v1415_v38 }
 0x4f2   : > { %2869 = vpow2.f32 %v1418_v39 }
 0x4f3   : > { %v1537_v44 = vpop.xlane.xlu0 %1536 }
 0x4f4   : > { %v1541_v6 = vsub.f32 %v3423_v16, %v1537_v44 }
 0x4f5   : > { %v1540_v40 = vpop.xlane.xlu1 %1539 }
 0x4f6   : > { %v1542_v41 = vsub.f32 %v1531_v19, %v1540_v40  ;;  %v1543_v7 = vmul.f32 1.442695, %v1541_v6 }
 0x4f8   : > { %v1545_v42 = vmul.f32 1.442695, %v1542_v41 }
 0x4fa   : > { %v3435_v43 = vpop.eup %2867  ;;  %2871 = vpow2.f32 %v1545_v42 }
 0x4fb   : > { %v1420_v45 = vsel %vm1406_vm9, %v3435_v43, 0.0  ;;  %v1660_v51 = vpop.xlane.xlu0 %1659 }
 0x4fc   : > { %v3439_v46 = vpop.eup %2869  ;;  %1421 = vadd.xlane.f32.xlu0 %v1420_v45  ;;  %v1664_v8 = vsub.f32 %v3428_v22, %v1660_v51 }
 0x4fd   : > { %v1663_v47 = vpop.xlane.xlu1 %1662  ;;  %v1423_v48 = vsel %vm1410_vm10, %v3439_v46, 0.0 }
 0x4fe   : > { %v1665_v49 = vsub.f32 %v1654_v25, %v1663_v47  ;;  %1424 = vadd.xlane.f32.xlu1 %v1423_v48  ;;  %v1666_v9 = vmul.f32 1.442695, %v1664_v8 }
 0x500   : > { %v1668_v54 = vmul.f32 1.442695, %v1665_v49 }
 0x502   : > { %2873 = vpow2.f32 %v1668_v54 }
 0x503   : > { %v1783_v55 = vpop.xlane.xlu0 %1782 }
 0x504   : > { %v3443_v56 = vpop.eup %2871  ;;  %v1787_v57 = vsub.f32 %v1774_v28, %v1783_v55 }
 0x505   : > { %v1786_v58 = vpop.xlane.xlu1 %1785  ;;  %v1550_v59 = vsel %vm1410_vm10, %v3443_v56, 0.0 }
 0x506   : > { %v1789_v60 = vmul.f32 1.442695, %v1787_v57  ;;  %v1788_v61 = vsub.f32 %v1777_v31, %v1786_v58  ;;  %1551 = vadd.xlane.f32.xlu1 %v1550_v59 }
 0x508   : > { %2875 = vpow2.f32 %v1789_v60  ;;  %v1791_v63 = vmul.f32 1.442695, %v1788_v61 }
 0x50a   : > { %2877 = vpow2.f32 %v1791_v63  ;;  %v2859_v63 = vld [vmem:[%s3275_s0] sm:$0xff]  }
 0x50b   : > { %2879 = vpow2.f32 %v1543_v7  ;;  %2705 = vmatpush3.bf16.msra.mxu1 %v2859_v63 }
 0x50c   : > { %v3447_v0 = vpop.eup %2873  ;;  %2881 = vpow2.f32 %v1666_v9  ;;  %2706 = vmatprep.subr.bf16.mxu1 %v3011_v50 }
 0x50d   : > { %v1673_v1 = vsel %vm1410_vm10, %v3447_v0, 0.0 }
 0x50e   : > { %1674 = vadd.xlane.f32.xlu1 %v1673_v1 }
 0x512   : > { %v3451_v2 = vpop.eup %2875  ;;  %1431 = vrot.lane.b32.xlu0 %v3391_v62, %s3020_s2  ;;  %s3732_s2 = scalar_lea.vmem %s3641_s17, %s3246_s1 }
 0x513   : > { %v1793_v3 = vsel %vm1406_vm9, %v3451_v2, 0.0 }
 0x514   : > { %v3456_v4 = vpop.eup %2877  ;;  %1794 = vadd.xlane.f32.xlu1 %v1793_v3 }
 0x515   : > { %v1796_v5 = vsel %vm1410_vm10, %v3456_v4, 0.0  ;;  %v2880_v10 = vpop.eup %2879 }
 0x516   : > { %v1547_v11 = vsel %vm1406_vm9, %v2880_v10, 0.0  ;;  %v2882_v12 = vpop.eup %2881 }
 0x517   : > { %v1670_v13 = vsel %vm1406_vm9, %v2882_v12, 0.0 }
 0x518   : > { %1797 = vadd.xlane.f32.xlu1 %v1796_v5 }
 0x529   : > { %1558 = vrot.lane.b32.xlu1 %v3391_v62, %s3021_s25 }
 0x531   : > { %1548 = vadd.xlane.f32.xlu0 %v1547_v11 }
 0x535   : > { %1671 = vadd.xlane.f32.xlu0 %v1670_v13 }
 0x54b   : > { %1681 = vrot.lane.b32.xlu0 %v3391_v62, %s3022_s18  ;;  %s3739_s18 = sld [smem:[#allocation38_spill]] (!%p2564_p1) }
 0x54f   : > { %1804 = vrot.lane.b32.xlu0 %v3391_v62, %s3023_s30  ;;  %s3733_s30 = scalar_lea.vmem %s3643_s19, %s3246_s1 }
 0x589   : > { %v1422_v16 = vpop.xlane.xlu0 %1421 }
 0x58a   : > { %2883 = vrcp.f32 %v1422_v16 }
 0x58b   : > { %v1425_v17 = vpop.xlane.xlu1 %1424 }
 0x58c   : > { %2885 = vrcp.f32 %v1425_v17 }
 0x58d   : > { %v1432_v19 = vpop.permute.xlu0 %1431 }
 0x58e   : > { %v1441_v20 = vand.u32 %v1439_v18, %v1432_v19 }
 0x590   : > { %2663 = vmatpush3.bf16.msra.mxu0 %v1441_v20 }
 0x591   : > { %2674 = vmatprep.subr.bf16.mxu0 %v3011_v50 }
 0x593   : > { %v1552_v24 = vpop.xlane.xlu1 %1551 }
 0x594   : > { %v2884_v21 = vpop.eup %2883  ;;  %2887 = vrcp.f32 %v1552_v24 }
 0x595   : > { %v1428_v23 = vmul.f32 %v2884_v21, %v3435_v43 }
 0x596   : > { %v2886_v22 = vpop.eup %2885 }
 0x597   : > { %v1429_v62 = vmul.f32 %v2886_v22, %v3439_v46 }
 0x599   : > { %v1430_v25 = vpack.c.bf16 %v1429_v62, %v1428_v23 }
 0x59b   : > { %2665 = vmatmul.mubr.msk.bf16.vlgmr.msra.gmra.mrb[4].mxu0 %vm1406_vm9, %v1430_v25  ;;  %v1675_v26 = vpop.xlane.xlu1 %1674 }
 0x59c   : > { %2676 = vmatprep.mubr.msk.bf16.mxu0 %vm3012_vm6, %v3011_v50 }
 0x59e   : > { %v2888_v33 = vpop.eup %2887 }
 0x59f   : > { %v1556_v35 = vmul.f32 %v2888_v33, %v3443_v56 }
 0x5a1   : > { %v1795_v27 = vpop.xlane.xlu1 %1794 }
 0x5a5   : > { %v1798_v28 = vpop.xlane.xlu1 %1797 }
 0x5a9   : > { %v1559_v29 = vpop.permute.xlu1 %1558 }
 0x5aa   : > { %v1564_v30 = vand.u32 %v1559_v29, %v1439_v18 }
 0x5ac   : > { %2675 = vmatpush3.bf16.msra.mxu0 %v1564_v30 }
 0x5ad   : > { %2686 = vmatprep.subr.bf16.mxu0 %v3011_v50 }
 0x5be   : > { %v1549_v31 = vpop.xlane.xlu0 %1548 }
 0x5bf   : > { %2889 = vrcp.f32 %v1549_v31 }
 0x5c2   : > { %v1672_v32 = vpop.xlane.xlu0 %1671 }
 0x5c3   : > { %2891 = vrcp.f32 %v1672_v32 }
 0x5c4   : > { %2893 = vrcp.f32 %v1675_v26 }
 0x5c5   : > { %2895 = vrcp.f32 %v1798_v28  ;;  %v2546_v28 = vld [vmem:[%s3730_s8] ss:$0 sm:$0xff]  ;;  %s3735_s8 = scalar_lea.vmem %s3734_s23, %s3246_s1 }
 0x5c6   : > { %v1682_v37 = vpop.permute.xlu0 %1681  ;;  %2897 = vrcp.f32 %v1795_v27 }
 0x5c7   : > { %v1687_v40 = vand.u32 %v1682_v37, %v1439_v18 }
 0x5c9   : > { %v2890_v34 = vpop.eup %2889 }
 0x5ca   : > { %v1555_v36 = vmul.f32 %v2890_v34, %v2880_v10  ;;  %v1805_v44 = vpop.permute.xlu0 %1804 }
 0x5cb   : > { %v1810_v47 = vand.u32 %v1805_v44, %v1439_v18 }
 0x5cc   : > { %v1557_v38 = vpack.c.bf16 %v1556_v35, %v1555_v36 }
 0x5cd   : > { %v2892_v39 = vpop.eup %2891 }
 0x5ce   : > { %2677 = vmatmul.mubr.msk.bf16.vlgmr.msra.gmra.mrb[8].mxu0 %vm1406_vm9, %v1557_v38  ;;  %v2894_v41 = vpop.eup %2893  ;;  %v1678_v42 = vmul.f32 %v2892_v39, %v2882_v12 }
 0x5cf   : > { %2687 = vmatpush3.bf16.msra.mxu0 %v1687_v40  ;;  %2688 = vmatprep.mubr.msk.bf16.mxu0 %vm3012_vm6, %v3011_v50  ;;  %v1679_v43 = vmul.f32 %v2894_v41, %v3447_v0  ;;  %v2896_v46 = vpop.eup %2895 }
 0x5d0   : > { %2698 = vmatprep.subr.bf16.mxu0 %v3011_v50  ;;  %v2898_v48 = vpop.eup %2897  ;;  %v1802_v49 = vmul.f32 %v2896_v46, %v3456_v4  ;;  %v2860_v4 = vld [vmem:[%s3275_s0 + $0x8] sm:$0xff]  }
 0x5d1   : > { %v1680_v45 = vpack.c.bf16 %v1679_v43, %v1678_v42  ;;  %v1801_v51 = vmul.f32 %v2898_v48, %v3451_v2  ;;  %2707 = vmatpush3.bf16.msra.mxu1 %v2860_v4  ;;  %v2862_v48 = vld [vmem:[%s3292_s29 + $0x8] sm:$0xff]  }
 0x5d2   : > { %2720 = vmatprep.subr.bf16.mxu1 %v3011_v50 }
 0x5d3   : > { %v1803_v54 = vpack.c.bf16 %v1802_v49, %v1801_v51 }
 0x5d6   : > { %2689 = vmatmul.mubr.msk.bf16.vlgmr.msra.gmra.mrb[12].mxu0 %vm1406_vm9, %v1680_v45 }
 0x5d7   : > { %2699 = vmatpush3.bf16.msra.mxu0 %v1810_v47  ;;  %2700 = vmatprep.mubr.msk.bf16.mxu0 %vm3012_vm6, %v3011_v50 }
 0x5d8   : > { %2712 = vmatprep.subr.bf16.mxu0 %v3011_v50 }
 0x5de   : > { %2701 = vmatmul.mubr.msk.bf16.vlgmr.msra.gmra.mrb[16].mxu0 %vm1406_vm9, %v1803_v54 }
 0x5df   : > { %2716 = vmatprep.mubr.msk.bf16.mxu0 %vm3012_vm6, %v3011_v50 }
 0x66e   : > { %v1477_v55 = vpop.f32.mrb[4].mxu0 }
 0x66f   : > { %v2666_v56 = vpop.f32.mrb[5].mxu0 }
 0x670   : > { %v1480_v57 = vpop.f32.mrb[6].mxu0 }
 0x671   : > { %v2667_v58 = vpop.f32.mrb[7].mxu0 }
 0x6a1   : > { %v1600_v59 = vpop.f32.mrb[8].mxu0 }
 0x6a2   : > { %v2678_v60 = vpop.f32.mrb[9].mxu0 }
 0x6a3   : > { %v1603_v61 = vpop.f32.mrb[10].mxu0 }
 0x6a4   : > { %v2842_v0 = vpack.i.bf16 %v1603_v61, %v1600_v59  ;;  %v2679_v1 = vpop.f32.mrb[11].mxu0 }
 0x6a5   : > { %v2551_v1 = vld [vmem:[%s3732_s2] ss:$0 sm:$0xff] }
 0x6a6   : > { %2843 = vrot.lane.b32.xlu1 %v2842_v0, %s3025_s10 }
 0x6a9   : > { %v1723_v2 = vpop.f32.mrb[12].mxu0 }
 0x6aa   : > { %v2690_v3 = vpop.f32.mrb[13].mxu0 }
 0x6ab   : > { %v1726_v5 = vpop.f32.mrb[14].mxu0 }
 0x6ac   : > { %v2847_v6 = vpack.i.bf16 %v1726_v5, %v1723_v2  ;;  %v2691_v7 = vpop.f32.mrb[15].mxu0 }
 0x6ad   : > { %v2864_v7 = vld [vmem:[%s3302_s3 + $0x8] sm:$0xff]  }
 0x6ae   : > { %2848 = vrot.lane.b32.xlu0 %v2847_v6, %s3026_s28  ;;  %v2863_v6 = vld [vmem:[%s3302_s3] sm:$0xff]  }
 0x6b1   : > { %v1846_v8 = vpop.f32.mrb[16].mxu0 }
 0x6b2   : > { %v2702_v9 = vpop.f32.mrb[17].mxu0 }
 0x6b3   : > { %v1849_v10 = vpop.f32.mrb[18].mxu0  ;;  %v2866_v9 = vld [vmem:[%s3302_s3 + $0x18] sm:$0xff]  }
 0x6b4   : > { %v2852_v11 = vpack.i.bf16 %v1849_v10, %v1846_v8  ;;  %v2703_v12 = vpop.f32.mrb[19].mxu0  ;;  %v2865_v8 = vld [vmem:[%s3302_s3 + $0x10] sm:$0xff]   ;;  %v2552_v10 = vld [vmem:[%s3733_s30] ss:$0 sm:$0xff]  ;;  %s3740_s30 = scalar_lea.vmem (!%p2564_p1), [#allocation3], %s3239_s4 }
 0x6b6   : > { %2853 = vrot.lane.b32.xlu1 %v2852_v11, %s3027_s27 }
 0x718   : > { %v2844_v13 = vpop.permute.xlu1 %2843 }
 0x719   : > { %v2846_v15 = vunpack.i.h.bf16 %v2844_v13  ;;  %v2845_v16 = vunpack.i.l.bf16 %v2844_v13 }
 0x71b   : > { %v1878_v20 = vsel %vm1358_vm8, %v1480_v57, %v2846_v15  ;;  %v1877_v21 = vsel %vm1358_vm8, %v1477_v55, %v2845_v16 }
 0x720   : > { %v2849_v14 = vpop.permute.xlu0 %2848 }
 0x721   : > { %v2851_v17 = vunpack.i.h.bf16 %v2849_v14  ;;  %v2850_v18 = vunpack.i.l.bf16 %v2849_v14 }
 0x723   : > { %v1881_v62 = vsel %vm1879_vm13, %v1878_v20, %v2851_v17  ;;  %v1880_v24 = vsel %vm1879_vm13, %v1877_v21, %v2850_v18 }
 0x728   : > { %v2854_v19 = vpop.permute.xlu1 %2853 }
 0x729   : > { %v2856_v22 = vunpack.i.h.bf16 %v2854_v19  ;;  %v2855_v23 = vunpack.i.l.bf16 %v2854_v19 }
 0x72b   : > { %v1884_v25 = vsel %vm1882_vm14, %v1881_v62, %v2856_v22  ;;  %v1883_v26 = vsel %vm1882_vm14, %v1880_v24, %v2855_v23 }
 0x72c   : > { %v1889_v27 = vpack.c.bf16 %v1884_v25, %v1883_v26  ;;  %v2556_v26 = vld [vmem:[%s1012_s24] ss:$0 sm:$0xff] }
 0x72e   : > { %2709 = vmatmul.mubr.msk.bf16.vlgmr.msra.gmra.mrb[16].mxu1 %vm1309_vm7, %v1889_v27 }
 0x72f   : > { %2728 = vmatprep.mubr.msk.bf16.mxu1 %vm3012_vm6, %v3011_v50  ;;  %2721 = vmatpush3.bf16.msra.mxu1 %v2863_v6 }
 0x730   : > { %2722 = vmatprep.subr.bf16.mxu1 %v3011_v50 }
 0x733   : > { %2723 = vmatpush3.bf16.msra.mxu1 %v2864_v7 }
 0x734   : > { %2724 = vmatprep.subr.bf16.mxu1 %v3011_v50 }
 0x737   : > { %2725 = vmatpush3.bf16.msra.mxu1 %v2865_v8 }
 0x738   : > { %2726 = vmatprep.subr.bf16.mxu1 %v3011_v50 }
 0x73b   : > { %2727 = vmatpush3.bf16.msra.mxu1 %v2866_v9 }
 0x801   : > { %v1946_v29 = vpop.f32.mrb[16].mxu1 }
 0x802   : > { %v1947_v30 = vadd.f32 %v2546_v28, %v1946_v29  ;;  %v2710_v31 = vpop.f32.mrb[17].mxu1 }
 0x803   : > { %v1949_v32 = vpop.f32.mrb[18].mxu1 }
 0x804   : > { %v1950_v33 = vadd.f32 %v2546_v28, %v1949_v32  ;;  %v2711_v34 = vpop.f32.mrb[19].mxu1  ;;  %v1953_v35 = vadd.f32 %v1947_v30, %v3373_v52 }
 0x806   : > { %v1957_v36 = vsel %vm1309_vm7, %v1953_v35, 0.0  ;;  %v1954_v37 = vadd.f32 %v1950_v33, %v3375_v53  ;;  %v2861_v53 = vld [vmem:[%s3292_s29] sm:$0xff]   ;;  %s3731_s29 = scalar_lea.vmem %s3640_s16, %s3246_s1 }
 0x807   : > { %1958 = vadd.xlane.f32.xlu0 %v1957_v36  ;;  %2713 = vmatpush3.bf16.msra.mxu0 %v2861_v53  ;;  %v2550_v60 = vld [vmem:[%s3731_s29] ss:$0 sm:$0xff]  ;;  %s3737_s29 = sld [smem:[#allocation37_spill]] (!%p2564_p1) }
 0x808   : > { %v1961_v38 = vsel %vm1960_vm15, %v1954_v37, 0.0  ;;  %2714 = vmatprep.subr.bf16.mxu0 %v3011_v50 }
 0x809   : > { %1962 = vadd.xlane.f32.xlu1 %v1961_v38 }
 0x80b   : > { %2715 = vmatpush3.bf16.msra.mxu0 %v2862_v48 }
 0x80d   : > { %s3738_s9 = smov (!%p2564_p1), %s3737_s29 }
 0x894   : > { %v1959_v39 = vpop.xlane.xlu0 %1958 }
 0x895   : > { %v1965_v40 = vmul.f32 0.03125, %v1959_v39 }
 0x896   : > { %v1963_v41 = vpop.xlane.xlu1 %1962 }
 0x897   : > { %v1967_v42 = vsub.f32 %v1953_v35, %v1965_v40  ;;  %v1966_v43 = vmul.f32 0.03125, %v1963_v41 }
 0x899   : > { %v1968_v44 = vsub.f32 %v1954_v37, %v1966_v43  ;;  %v1969_v45 = vmul.f32 %v1967_v42, %v1967_v42 }
 0x89b   : > { %v1971_v52 = vsel %vm1309_vm7, %v1969_v45, 0.0  ;;  %v1970_v46 = vmul.f32 %v1968_v44, %v1968_v44 }
 0x89c   : > { %1972 = vadd.xlane.f32.xlu0 %v1971_v52 }
 0x89d   : > { %v1974_v47 = vsel %vm1960_vm15, %v1970_v46, 0.0 }
 0x8a0   : > { %1975 = vadd.xlane.f32.xlu0 %v1974_v47 }
 0x929   : > { %v1973_v49 = vpop.xlane.xlu0 %1972 }
 0x92a   : > { %v1977_v51 = vmul.f32 0.03125, %v1973_v49 }
 0x92c   : > { %v1979_v54 = vadd.f32 1e-05, %v1977_v51 }
 0x92d   : > { %v1976_v55 = vpop.xlane.xlu0 %1975 }
 0x92e   : > { %2899 = vrsqrt.f32 %v1979_v54  ;;  %v1978_v56 = vmul.f32 0.03125, %v1976_v55  ;;  %v2562_v55 = vld [vmem:[%s1015_s11] ss:$0 sm:$0xff] }
 0x930   : > { %v1980_v57 = vadd.f32 1e-05, %v1978_v56 }
 0x932   : > { %2901 = vrsqrt.f32 %v1980_v57 }
 0x938   : > { %v2900_v58 = vpop.eup %2899 }
 0x939   : > { %v1983_v59 = vmul.f32 %v2900_v58, %v1967_v42  ;;  %v2563_v58 = vld [vmem:[%s3735_s8] ss:$0 sm:$0xff] }
 0x93b   : > { %v1991_v63 = vmul.f32 %v2550_v60, %v1983_v59 }
 0x93c   : > { %v2902_v61 = vpop.eup %2901 }
 0x93d   : > { %v1984_v0 = vmul.f32 %v2902_v61, %v1968_v44  ;;  %v1999_v3 = vadd.f32 %v2551_v1, %v1991_v63 }
 0x93f   : > { %v1992_v2 = vmul.f32 %v2550_v60, %v1984_v0 }
 0x941   : > { %v2000_v4 = vadd.f32 %v2551_v1, %v1992_v2  ;;  %v2911_v1 = vld [vmem:[%s3737_s29] sm:$0xff] (!%p2564_p1)   ;;  %v3028_v2 = vmov (!%p2564_p1), 0.0  }
 0x942   : > { %2732 = vmatprep.subr.bf16.mxu0 (!%p2564_p1), %v3028_v2 }
 0x943   : > { %v2005_v5 = vpack.c.bf16 %v2000_v4, %v1999_v3 }
 0x945   : > { %2717 = vmatmul.mubr.msk.bf16.vlgmr.msra.gmra.mrb[20].mxu0 %vm1309_vm7, %v2005_v5  ;;  %v2565_v5 = vld [vmem:[%s3739_s18] ss:$0 sm:$0xff] (!%p2564_p1) }
 0x946   : > { %2733 = vmatpush3.bf16.msra.mxu0 (!%p2564_p1), %v2911_v1  ;;  %2736 = vmatprep.mubr.msk.bf16.mxu0 (!%p2564_p1), %vm3029_vm1, %v3028_v2 }
 0x947   : > { %2734 = vmatprep.subr.bf16.mxu0 (!%p2564_p1), %v3028_v2 }
 0xa18   : > { %v2062_v11 = vpop.f32.mrb[20].mxu0 }
 0xa19   : > { %v2063_v12 = vadd.f32 %v2552_v10, %v2062_v11  ;;  %v2718_v13 = vpop.f32.mrb[21].mxu0 }
 0xa1a   : > { %v2065_v14 = vpop.f32.mrb[22].mxu0 }
 0xa1b   : > { %v2071_v15 = vmul.f32 0.70710677, %v2063_v12  ;;  %v2066_v16 = vadd.f32 %v2552_v10, %v2065_v14  ;;  %v2719_v17 = vpop.f32.mrb[23].mxu0  ;;  %v2069_v21 = vmul.f32 0.5, %v2063_v12 }
 0xa1d   : > { %2903 = verf.f32 %v2071_v15  ;;  %v2072_v18 = vmul.f32 0.70710677, %v2066_v16  ;;  %v2070_v22 = vmul.f32 0.5, %v2066_v16 }
 0xa1f   : > { %2905 = verf.f32 %v2072_v18 }
 0xa27   : > { %v2904_v19 = vpop.eup %2903 }
 0xa28   : > { %v2075_v50 = vadd.f32 1.0, %v2904_v19 }
 0xa29   : > { %v2906_v20 = vpop.eup %2905 }
 0xa2a   : > { %v2076_v23 = vadd.f32 1.0, %v2906_v20  ;;  %v2077_v62 = vmul.f32 %v2075_v50, %v2069_v21 }
 0xa2c   : > { %v2078_v24 = vmul.f32 %v2076_v23, %v2070_v22 }
 0xa2e   : > { %v2087_v25 = vpack.c.bf16 %v2078_v24, %v2077_v62 }
 0xa30   : > { %2729 = vmatmul.mubr.msk.bf16.vlgmr.msra.gmra.mrb[20].mxu1 %vm2119_vm0, %v2087_v25 }
 0xb03   : > { %v2157_v27 = vpop.f32.mrb[20].mxu1 }
 0xb04   : > { %v2158_v28 = vadd.f32 %v2556_v26, %v2157_v27  ;;  %v2730_v29 = vpop.f32.mrb[21].mxu1 }
 0xb05   : > { %v2160_v30 = vpop.f32.mrb[22].mxu1 }
 0xb06   : > { %v2161_v31 = vadd.f32 %v2556_v26, %v2160_v30  ;;  %v2731_v32 = vpop.f32.mrb[23].mxu1  ;;  %v2164_v33 = vadd.f32 %v2158_v28, %v1999_v3  ;;  %v2912_v3 = vld [vmem:[%s3738_s9 + $0x8] sm:$0xff] (!%p2564_p1)  }
 0xb07   : > { %2735 = vmatpush3.bf16.msra.mxu0 (!%p2564_p1), %v2912_v3 }
 0xb08   : > { %v2168_v34 = vsel %vm1309_vm7, %v2164_v33, 0.0  ;;  %v2165_v35 = vadd.f32 %v2161_v31, %v2000_v4 }
 0xb09   : > { %2169 = vadd.xlane.f32.xlu1 %v2168_v34 }
 0xb0a   : > { %v2171_v36 = vsel %vm1960_vm15, %v2165_v35, 0.0 }
 0xb0b   : > { %2172 = vadd.xlane.f32.xlu0 %v2171_v36 }
 0xb96   : > { %v2170_v37 = vpop.xlane.xlu1 %2169 }
 0xb97   : > { %v2174_v38 = vmul.f32 0.03125, %v2170_v37 }
 0xb98   : > { %v2173_v39 = vpop.xlane.xlu0 %2172 }
 0xb99   : > { %v2176_v40 = vsub.f32 %v2164_v33, %v2174_v38  ;;  %v2175_v41 = vmul.f32 0.03125, %v2173_v39 }
 0xb9b   : > { %v2177_v42 = vsub.f32 %v2165_v35, %v2175_v41  ;;  %v2178_v43 = vmul.f32 %v2176_v40, %v2176_v40 }
 0xb9d   : > { %v2180_v44 = vsel %vm1309_vm7, %v2178_v43, 0.0  ;;  %v2179_v45 = vmul.f32 %v2177_v42, %v2177_v42 }
 0xb9e   : > { %2181 = vadd.xlane.f32.xlu1 %v2180_v44 }
 0xb9f   : > { %v2183_v52 = vsel %vm1960_vm15, %v2179_v45, 0.0 }
 0xba0   : > { %2184 = vadd.xlane.f32.xlu0 %v2183_v52 }
 0xc2b   : > { %v2182_v46 = vpop.xlane.xlu1 %2181 }
 0xc2c   : > { %v2186_v47 = vmul.f32 0.03125, %v2182_v46 }
 0xc2d   : > { %v2185_v53 = vpop.xlane.xlu0 %2184 }
 0xc2e   : > { %v2188_v48 = vadd.f32 1e-05, %v2186_v47  ;;  %v2187_v49 = vmul.f32 0.03125, %v2185_v53 }
 0xc30   : > { %2907 = vrsqrt.f32 %v2188_v48  ;;  %v2189_v51 = vadd.f32 1e-05, %v2187_v49 }
 0xc32   : > { %2909 = vrsqrt.f32 %v2189_v51 }
 0xc3a   : > { %v2908_v54 = vpop.eup %2907 }
 0xc3b   : > { %v2192_v56 = vmul.f32 %v2908_v54, %v2176_v40 }
 0xc3c   : > { %v2910_v57 = vpop.eup %2909 }
 0xc3d   : > { %v2200_v59 = vmul.f32 %v2562_v55, %v2192_v56  ;;  %v2193_v60 = vmul.f32 %v2910_v57, %v2177_v42  ;;  %2215 = sbr.rel (%p2564_p1) target bundleno = 3354 (0xd1a), region = 132 }
 0xc3f   : > { %v2208_v61 = vadd.f32 %v2563_v58, %v2200_v59  ;;  %v2201_v63 = vmul.f32 %v2562_v55, %v2193_v60 }
 0xc41   : > { %2210 = vst.msk [vmem:[#allocation2] sm:$0xff] %vm1309_vm7, %v2208_v61  ;;  %v2209_v0 = vadd.f32 %v2563_v58, %v2201_v63  ;;  %v2220_v4 = vpack.c.bf16 (!%p2564_p1), %v2208_v61, %v2208_v61 }
 0xc43   : > { %2211 = vst.msk [vmem:[#allocation2 + $0x8] sm:$0x1] %vm1960_vm15, %v2209_v0  ;;  %2737 = vmatmul.mubr.msk.bf16.vlgmr.msra.gmra.mrb[0].mxu0 (!%p2564_p1), %vm1309_vm7, %v2220_v4 }
 0xd16   : > { %v2277_v6 = vpop.f32.mrb[0].mxu0 }
 0xd17   : > { %v2278_v7 = vadd.f32 %v2565_v5, %v2277_v6  ;;  %v2738_v8 = vpop.f32.mrb[1].mxu0 }
 0xd18   : > { %v2280_v9 = vpop.f32.mrb[2].mxu0 }
 0xd19   : > { %2283 = vst [vmem:[%s3740_s30] sm:$0xff] %v2278_v7  ;;  %v2739_v10 = vpop.f32.mrb[3].mxu0 }
 0xd1a PF: > { %s3741_s3 = sld [smem:[#allocation10_spill]]  ;;  %s3742_s10 = sld [smem:[#allocation7_spill]] }
 0xd1b   : > { %s3744_s23 = sld [smem:[#allocation39_spill]]  ;;  %s3745_s6 = scalar_lea.vmem [#allocation3], %s3239_s4 }
 0xd1c   : > { %s2298_s11 = sshll.u32 %s3745_s6, 4  ;;  %s3030_s12 = smov [#allocation3]   ;;  %s2299_s11 = int_to_ptr.vmem [resolvable:$true] %s2298_s11 }
 0xd1d   : > { %s2913_s1 = scalar_lea.vmem %s2299_s11, 128  ;;  %s2917_s2 = sshll.u32 %s3030_s12, 4  ;;  %s2918_s2 = int_to_ptr.vmem [resolvable:$false] %s2917_s2 }
 0xd1e   : > { %p2914_p2 = scmp.ne.s32.totalorder %s2299_s11, %s2913_s1  ;;  %s2919_s25 = scalar_lea.vmem %s2918_s2, 256 }
 0xd1f   : > { %p2920_p6 = scmp.lt.s32.totalorder %s2299_s11, %s2918_s2  ;;  %p2921_p7 = scmp.lt.s32.totalorder %s2919_s25, %s2913_s1 }
 0xd20   : > { %s2570_s28 = sshll.u32 %s3741_s3, 7  ;;  %s3746_s7 = sand.u32 1, %s3742_s10  }
 0xd21   : > { %s3573_s8 = scalar_lea.hbm %s3744_s23, %s2570_s28  ;;  %s2285_s29 = scalar_lea.sflag [#allocation4], %s3746_s7 }
 0xd22   : > { %p2915_p4 = pnand %p2914_p2, %p3215_p3  ;;  %p2922_p8 = por %p2921_p7, %p2920_p6 }
 0xd24   : > { %p2916_p5 = pneg %p2915_p4 }
 0xd26   : > { %p2923_p10 = pnand %p2922_p8, %p2916_p5 }
 0xd28   : > { %2926 = shalt.err (!%p2923_p10)
}
 0xd29   : > { %s2927_s4 = scalar_lea.hbm %s3573_s8, 128  ;;  %s2931_s3 = scalar_lea.hbm %s3744_s23, 256 }
 0xd2a   : > { %p2928_p11 = scmp.ne.s32.totalorder %s3573_s8, %s2927_s4  ;;  %p2932_p0 = scmp.lt.u32.totalorder %s3573_s8, %s3744_s23 }
 0xd2b   : > { %p2933_p1 = scmp.lt.u32.totalorder %s2931_s3, %s2927_s4  ;;  %p2935_p4 = scmp.lt.u32.totalorder %s2927_s4, %s3573_s8 }
 0xd2c   : > { %p2929_p12 = pnand %p2928_p11, %p3215_p3 }
 0xd2d   : > { %p2934_p2 = por %p2933_p1, %p2932_p0 }
 0xd2e   : > { %p2930_p13 = pneg %p2929_p12 }
 0xd2f   : > { %p2936_p5 = por %p2935_p4, %p2934_p2 }
 0xd31   : > { %p2937_p6 = pnand %p2936_p5, %p2930_p13 }
 0xd33   : > { %2940 = shalt.err (!%p2937_p6)
}
 0xd34   : > { %2740 = dma.vmem_to_hbm [thread:$0]  (%p3215_p3), %s2299_s11, 128, %s3573_s8, %s2285_s29  }
 0xd35 PF: > { %s3747_s27 = sld [smem:[#allocation13_spill]]  ;;  %s3748_s0 = sld [smem:[#allocation6_spill]] }
 0xd3b   : > { %p2746_p7 = scmp.ge.s32.totalorder %s3747_s27, 2  ;;  %s2310_s7 = sand.u32 1, %s3748_s0  }
 0xd3c   : > { %s2311_s1 = scalar_lea.sflag [#allocation4], %s2310_s7 }
 0xd3d   : > { %p2743_p8 = pnand %p2746_p7, %p3225_p9 }
 0xd3f   : > { %2974 = dma.done.wait (!%p2743_p8), %s2311_s1, 128  }
 0xd40   : > { %2976 = vsyncadd (!%p2743_p8), %s2311_s1, 4294967168  ;;  %s39_s0 = sadd.s32 1, %s3747_s27   ;;  %s3750_s27 = sld [smem:[#allocation7_spill]] }
 0xd41   : > { %p36_p10 = scmp.ge.s32.totalorder %s39_s0, 6   ;;  %s3751_s3 = sld [smem:[#allocation8_spill]] }
 0xd42   : > { %s3752_s7 = sld [smem:[#allocation18_spill]]  ;;  %s3753_s28 = sld [smem:[#allocation11_spill]] }
 0xd43   : > { %s3754_s8 = sld [smem:[#allocation12_spill]]  ;;  %s3755_s4 = sld [smem:[#allocation14_spill]] }
 0xd44   : > { %s3756_s29 = sld [smem:[#allocation16_spill]]  ;;  %38 = sbr.rel (!%p36_p10) target bundleno = 25 (0x19), region = 209 }
 0xd4b   :  { %2316 = vsyncpa [#allocation4], 1 }
 0xd4c   :  { %2318 = vsyncpa [#allocation4 + $0x1], 1 }

</bundles_post_ra>
